<compile_context>
chip_gen: v7x
topology: tpu7x:2x2x1
jax: 0.10.0
libtpu: 0.0.40
codegen_flags: <defaults>
</compile_context>

<pallas_src>
import functools

import jax
import jax.numpy as jnp
from jax.experimental import pallas as pl
from jax.experimental.pallas import tpu as pltpu


def _round_up(x, m):
    return ((x + m - 1) // m) * m


# ---------------------------------------------------------------------------
# Fused kernel: the entire FractalBlock tree for one image per grid step.
# ---------------------------------------------------------------------------
def _fractal_fused_kernel(*refs, depth, height, width, num_stages):
    """refs = [x, mask, (w_s, sb_s) * num_stages, out_0 .. out_{depth-1}].

    x:    (1, Cin_pad, HW)        channel-padded input, NCHW flattened over HW
    mask: (8, HW)                 0/1 boundary masks for the 8 non-center taps
    w_s:  (Cout_pad, 9*Cin_pad_s) tap-major conv weight, zero-padded rows/cols
    sb_s: (Cout_pad, 2)           [:,0]=gamma/sqrt(var+eps)/k_join,
                                  [:,1]=beta - mean*scale
    out:  (1, Cout_pad, HW)       one per fractal column
    """
    hw = height * width
    x_ref, m_ref = refs[0], refs[1]
    stage_refs = refs[2:2 + 2 * num_stages]
    out_refs = refs[2 + 2 * num_stages:]

    masks = m_ref[...]                       # (8, HW): loaded once, reused by all stages
    x0 = x_ref[0]                            # (Cin_pad, HW) f32

    cursor = {"i": 0}                        # trace-time stage counter

    def conv_bn_relu(xs):
        """join(xs) -> conv3x3(pad=1) -> BN(eval) -> ReLU; 1/k folded into scale."""
        s = cursor["i"]
        cursor["i"] += 1
        w = stage_refs[2 * s][...]           # (Cout_pad, 9*Cin_pad)
        sb = stage_refs[2 * s + 1][...]      # (Cout_pad, 2)

        x = xs[0]
        for r in xs[1:]:                     # join(): plain sum (1/k lives in sb[:,0])
            x = x + r

        taps, mrow = [], 0
        for kh in range(3):
            for kw in range(3):
                dh, dw = kh - 1, kw - 1
                if dh == 0 and dw == 0:
                    taps.append(x)           # center tap: identity, no mask
                else:
                    shift = (-(dh * width + dw)) % hw          # static shift
                    m = masks[mrow:mrow + 1, :]                # (1, HW)
                    mrow += 1
                    taps.append(jnp.where(m != 0.0,
                                          pltpu.roll(x, shift=shift, axis=1),
                                          0.0))
        # Each tap is a full (8, HW) sublane tile -> concat is tile-aligned.
        xcol = jnp.concatenate(taps, axis=0)                   # (9*Cin_pad, HW)
        acc = jnp.dot(w, xcol, preferred_element_type=jnp.float32)
        return jnp.maximum(acc * sb[:, 0:1] + sb[:, 1:2], 0.0)

    def fractal(xs, d):
        y = [conv_bn_relu(xs)]
        if d > 1:
            b1 = fractal(xs, d - 1)
            y.extend(fractal(b1, d - 1))     # join(b1) folded into the consumers
        return y

    outs = fractal([x0], depth)
    for o_ref, o in zip(out_refs, outs):
        o_ref[0] = o.astype(o_ref.dtype)


# ---------------------------------------------------------------------------
# Host-side helpers
# ---------------------------------------------------------------------------
def _boundary_mask(height, width):
    """(8, HW) 0/1 masks (row order: kh,kw scan skipping the center tap)."""
    hw = height * width
    pos = jnp.arange(hw, dtype=jnp.int32)
    row, col = pos // width, pos % width
    rows = []
    for kh in range(3):
        for kw in range(3):
            if kh == 1 and kw == 1:
                continue
            dh, dw = kh - 1, kw - 1
            ok = ((row + dh >= 0) & (row + dh < height) &
                  (col + dw >= 0) & (col + dw < width))
            rows.append(ok.astype(jnp.float32))
    return jnp.stack(rows)


def fractal_block_pallas(stage_params, x_pad, depth, height, width, cout_pad):
    """One pallas_call for the whole tree. stage_params: [(w_flat, sb), ...]."""
    n, cin_pad, hw = x_pad.shape
    assert hw == height * width
    num_stages = len(stage_params)
    mask = _boundary_mask(height, width)

    in_specs = [
        pl.BlockSpec((1, cin_pad, hw), lambda i: (i, 0, 0)),
        pl.BlockSpec((8, hw), lambda i: (0, 0)),
    ]
    flat_args = [x_pad, mask]
    for w_flat, sb in stage_params:
        in_specs.append(pl.BlockSpec(w_flat.shape, lambda i: (0, 0)))
        in_specs.append(pl.BlockSpec(sb.shape, lambda i: (0, 0)))
        flat_args += [w_flat, sb]

    kernel = functools.partial(_fractal_fused_kernel, depth=depth,
                               height=height, width=width,
                               num_stages=num_stages)
    # NOTE: for larger N one could pack NB images per grid step along the lane
    # axis to widen the matmuls, keeping >=2 parallel steps for v7x's two TCs.
    return pl.pallas_call(
        kernel,
        out_shape=tuple(jax.ShapeDtypeStruct((n, cout_pad, hw), jnp.float32)
                        for _ in range(depth)),
        grid=(n,),
        in_specs=in_specs,
        out_specs=tuple(pl.BlockSpec((1, cout_pad, hw), lambda i: (i, 0, 0))
                        for _ in range(depth)),
        compiler_params=pltpu.CompilerParams(
            dimension_semantics=("parallel",)),
    )(*flat_args)


# ---------------------------------------------------------------------------
# Deterministic parameter init (mirrors nn.Conv2d + nn.BatchNorm2d, eval mode)
# ---------------------------------------------------------------------------
def init_convblock(key, cin, cout):
    k1, k2, k3, k4, k5 = jax.random.split(key, 5)
    bound = (1.0 / (cin * 9)) ** 0.5
    w = jax.random.uniform(k1, (cout, cin, 3, 3), jnp.float32, -bound, bound)  # OIHW
    gamma = jax.random.uniform(k2, (cout,), jnp.float32, 0.5, 1.5)
    beta = jax.random.uniform(k3, (cout,), jnp.float32, -0.1, 0.1)
    rmean = jax.random.uniform(k4, (cout,), jnp.float32, -0.1, 0.1)
    rvar = jax.random.uniform(k5, (cout,), jnp.float32, 0.5, 1.5)
    eps = 1e-5
    scale = gamma / jnp.sqrt(rvar + eps)
    bias = beta - rmean * scale

    cin_p, cout_p = _round_up(cin, 8), _round_up(cout, 8)
    # Tap-major, channel-padded flattened weight: column index = t*cin_p + c.
    w_tap = w.transpose(0, 2, 3, 1)                           # (Cout, 3, 3, Cin)
    w_flat = jnp.zeros((cout_p, 9 * cin_p), jnp.float32)
    for t in range(9):
        kh, kw = divmod(t, 3)
        w_flat = w_flat.at[:cout, t * cin_p:t * cin_p + cin].set(w_tap[:, kh, kw, :])
    scale_p = jnp.zeros((cout_p,), jnp.float32).at[:cout].set(scale)
    bias_p = jnp.zeros((cout_p,), jnp.float32).at[:cout].set(bias)
    return {"w_oihw": w, "scale": scale, "bias": bias,
            "w_flat": w_flat, "scale_pad": scale_p, "bias_pad": bias_p}


def init_fractal(key, cin, cout, depth):
    if depth == 1:
        return {"block0": init_convblock(key, cin, cout)}
    k0, k1, k2 = jax.random.split(key, 3)
    return {
        "block0": init_convblock(k0, cin, cout),
        "block1": init_fractal(k1, cin, cout, depth - 1),
        "block2": init_fractal(k2, cout, cout, depth - 1),
    }


def _flatten_stages(params, depth, k_join):
    """Preorder (block0, block1-subtree, block2-subtree); folds 1/k into scale."""
    p = params["block0"]
    sb = jnp.stack([p["scale_pad"] / float(k_join), p["bias_pad"]], axis=1)
    stages = [(p["w_flat"], sb)]
    if depth > 1:
        stages += _flatten_stages(params["block1"], depth - 1, k_join)
        stages += _flatten_stages(params["block2"], depth - 1, depth - 1)
    return stages


# ---------------------------------------------------------------------------
# Public entry point: NCHW in, list of depth NCHW tensors out (eval forward)
# ---------------------------------------------------------------------------
@functools.partial(jax.jit, static_argnames=("depth",))
def fractal_block_nchw(params, x_nchw, depth):
    n, cin, h, w = x_nchw.shape
    cin_p = _round_up(cin, 8)
    x_pad = jnp.zeros((n, cin_p, h * w), jnp.float32)
    x_pad = x_pad.at[:, :cin, :].set(x_nchw.reshape(n, cin, h * w).astype(jnp.float32))
    cout = params["block0"]["scale"].shape[0]
    cout_p = _round_up(cout, 8)
    stages = _flatten_stages(params, depth, 1)
    outs = fractal_block_pallas(stages, x_pad, depth, h, w, cout_p)
    return [o[:, :cout, :].reshape(n, cout, h, w) for o in outs]


# ---------------------------------------------------------------------------
# Plain-JAX reference (mirrors the PyTorch module) for numerical verification
# ---------------------------------------------------------------------------
def _ref_convblock(x_nchw, p):
    y = jax.lax.conv_general_dilated(
        x_nchw, p["w_oihw"], window_strides=(1, 1), padding=((1, 1), (1, 1)),
        dimension_numbers=("NCHW", "OIHW", "NCHW"))
    y = y * p["scale"][None, :, None, None] + p["bias"][None, :, None, None]
    return jnp.maximum(y, 0.0)


def _ref_fractal(params, x, depth):
    y = [_ref_convblock(x, params["block0"])]
    if depth > 1:
        b1 = _ref_fractal(params["block1"], x, depth - 1)
        z = jnp.mean(jnp.stack(b1), axis=0)
        y.extend(_ref_fractal(params["block2"], z, depth - 1))
    return y


if __name__ == "__main__":
    # Small shapes consistent with the module: FractalBlock(in=4, out=8, depth=3)
    N, CIN, COUT, H, W, DEPTH = 2, 4, 8, 16, 16, 3

    key = jax.random.PRNGKey(0)
    kx, kp = jax.random.split(key)
    x = jax.random.normal(kx, (N, CIN, H, W), jnp.float32)   # NCHW, like PyTorch
    params = init_fractal(kp, CIN, COUT, DEPTH)

    outs = fractal_block_nchw(params, x, depth=DEPTH)
    outs = jax.block_until_ready(outs)

    refs = jax.block_until_ready(_ref_fractal(params, x, DEPTH))

    assert len(outs) == DEPTH
    for o, r in zip(outs, refs):
        assert o.shape == (N, COUT, H, W)
        assert bool(jnp.all(jnp.isfinite(o)))
        assert bool(jnp.all(o >= 0.0))                       # ReLU output
        err = float(jnp.max(jnp.abs(o - r)))
        assert err < 2e-3, f"mismatch vs reference: {err}"

    print("KERNEL_OK")
</pallas_src>

<mosaic_0001>
module attributes {stable_mosaic.version = 11 : i64} {
  func.func @_fractal_fused_kernel(%arg0: i32, %arg1: memref<1x8x256xf32, #tpu.memory_space<vmem>>, %arg2: memref<8x256xf32, #tpu.memory_space<vmem>>, %arg3: memref<8x72xf32, #tpu.memory_space<vmem>>, %arg4: memref<8x2xf32, #tpu.memory_space<vmem>>, %arg5: memref<8x72xf32, #tpu.memory_space<vmem>>, %arg6: memref<8x2xf32, #tpu.memory_space<vmem>>, %arg7: memref<8x72xf32, #tpu.memory_space<vmem>>, %arg8: memref<8x2xf32, #tpu.memory_space<vmem>>, %arg9: memref<8x72xf32, #tpu.memory_space<vmem>>, %arg10: memref<8x2xf32, #tpu.memory_space<vmem>>, %arg11: memref<8x72xf32, #tpu.memory_space<vmem>>, %arg12: memref<8x2xf32, #tpu.memory_space<vmem>>, %arg13: memref<8x72xf32, #tpu.memory_space<vmem>>, %arg14: memref<8x2xf32, #tpu.memory_space<vmem>>, %arg15: memref<8x72xf32, #tpu.memory_space<vmem>>, %arg16: memref<8x2xf32, #tpu.memory_space<vmem>>, %arg17: memref<1x8x256xf32, #tpu.memory_space<vmem>>, %arg18: memref<1x8x256xf32, #tpu.memory_space<vmem>>, %arg19: memref<1x8x256xf32, #tpu.memory_space<vmem>>) attributes {dimension_semantics = [#tpu.dimension_semantics<parallel>], iteration_bounds = array<i64: 2>, scalar_prefetch = 0 : i64, scratch_operands = 0 : i64, tpu.core_type = #tpu.core_type<tc>, window_params = [{transform_indices = @transform_0, window_bounds = array<i64: 1, 8, 256>}, {pipeline_mode = #tpu.pipeline_mode<synchronous>, transform_indices = @transform_1, window_bounds = array<i64: 8, 256>}, {pipeline_mode = #tpu.pipeline_mode<synchronous>, transform_indices = @transform_2, window_bounds = array<i64: 8, 72>}, {pipeline_mode = #tpu.pipeline_mode<synchronous>, transform_indices = @transform_3, window_bounds = array<i64: 8, 2>}, {pipeline_mode = #tpu.pipeline_mode<synchronous>, transform_indices = @transform_4, window_bounds = array<i64: 8, 72>}, {pipeline_mode = #tpu.pipeline_mode<synchronous>, transform_indices = @transform_5, window_bounds = array<i64: 8, 2>}, {pipeline_mode = #tpu.pipeline_mode<synchronous>, transform_indices = @transform_6, window_bounds = array<i64: 8, 72>}, {pipeline_mode = #tpu.pipeline_mode<synchronous>, transform_indices = @transform_7, window_bounds = array<i64: 8, 2>}, {pipeline_mode = #tpu.pipeline_mode<synchronous>, transform_indices = @transform_8, window_bounds = array<i64: 8, 72>}, {pipeline_mode = #tpu.pipeline_mode<synchronous>, transform_indices = @transform_9, window_bounds = array<i64: 8, 2>}, {pipeline_mode = #tpu.pipeline_mode<synchronous>, transform_indices = @transform_10, window_bounds = array<i64: 8, 72>}, {pipeline_mode = #tpu.pipeline_mode<synchronous>, transform_indices = @transform_11, window_bounds = array<i64: 8, 2>}, {pipeline_mode = #tpu.pipeline_mode<synchronous>, transform_indices = @transform_12, window_bounds = array<i64: 8, 72>}, {pipeline_mode = #tpu.pipeline_mode<synchronous>, transform_indices = @transform_13, window_bounds = array<i64: 8, 2>}, {pipeline_mode = #tpu.pipeline_mode<synchronous>, transform_indices = @transform_14, window_bounds = array<i64: 8, 72>}, {pipeline_mode = #tpu.pipeline_mode<synchronous>, transform_indices = @transform_15, window_bounds = array<i64: 8, 2>}, {transform_indices = @transform_16, window_bounds = array<i64: 1, 8, 256>}, {transform_indices = @transform_17, window_bounds = array<i64: 1, 8, 256>}, {transform_indices = @transform_18, window_bounds = array<i64: 1, 8, 256>}]} {
    %c0 = arith.constant 0 : index
    %c0_0 = arith.constant 0 : index
    %0 = vector.load %arg2[%c0, %c0_0] : memref<8x256xf32, #tpu.memory_space<vmem>>, vector<8x256xf32>
    %c0_1 = arith.constant 0 : index
    %c0_2 = arith.constant 0 : index
    %c0_3 = arith.constant 0 : index
    %1 = vector.load %arg1[%c0_1, %c0_2, %c0_3] : memref<1x8x256xf32, #tpu.memory_space<vmem>>, vector<1x8x256xf32>
    %2 = vector.shape_cast %1 : vector<1x8x256xf32> to vector<8x256xf32>
    %c0_4 = arith.constant 0 : index
    %c0_5 = arith.constant 0 : index
    %3 = vector.load %arg3[%c0_4, %c0_5] : memref<8x72xf32, #tpu.memory_space<vmem>>, vector<8x72xf32>
    %c0_6 = arith.constant 0 : index
    %c0_7 = arith.constant 0 : index
    %4 = vector.load %arg4[%c0_6, %c0_7] : memref<8x2xf32, #tpu.memory_space<vmem>>, vector<8x2xf32>
    %5 = vector.extract_strided_slice %0 {offsets = [0, 0], sizes = [1, 256], strides = [1, 1]} : vector<8x256xf32> to vector<1x256xf32>
    %cst = arith.constant 0.000000e+00 : f32
    %6 = vector.broadcast %cst : f32 to vector<1x256xf32>
    %7 = arith.cmpf one, %5, %6 : vector<1x256xf32>
    %c17_i32 = arith.constant 17 : i32
    %8 = tpu.dynamic_rotate %2 by %c17_i32 dim 1 : vector<8x256xf32>, i32 -> vector<8x256xf32>
    %cst_8 = arith.constant 0.000000e+00 : f32
    %9 = vector.shape_cast %7 : vector<1x256xi1> to vector<1x256xi1>
    %10 = vector.broadcast %9 : vector<1x256xi1> to vector<8x256xi1>
    %11 = vector.broadcast %cst_8 : f32 to vector<8x256xf32>
    %12 = arith.select %10, %8, %11 : vector<8x256xi1>, vector<8x256xf32>
    %13 = vector.extract_strided_slice %0 {offsets = [1, 0], sizes = [1, 256], strides = [1, 1]} : vector<8x256xf32> to vector<1x256xf32>
    %cst_9 = arith.constant 0.000000e+00 : f32
    %14 = vector.broadcast %cst_9 : f32 to vector<1x256xf32>
    %15 = arith.cmpf one, %13, %14 : vector<1x256xf32>
    %c16_i32 = arith.constant 16 : i32
    %16 = tpu.dynamic_rotate %2 by %c16_i32 dim 1 : vector<8x256xf32>, i32 -> vector<8x256xf32>
    %cst_10 = arith.constant 0.000000e+00 : f32
    %17 = vector.shape_cast %15 : vector<1x256xi1> to vector<1x256xi1>
    %18 = vector.broadcast %17 : vector<1x256xi1> to vector<8x256xi1>
    %19 = vector.broadcast %cst_10 : f32 to vector<8x256xf32>
    %20 = arith.select %18, %16, %19 : vector<8x256xi1>, vector<8x256xf32>
    %21 = vector.extract_strided_slice %0 {offsets = [2, 0], sizes = [1, 256], strides = [1, 1]} : vector<8x256xf32> to vector<1x256xf32>
    %cst_11 = arith.constant 0.000000e+00 : f32
    %22 = vector.broadcast %cst_11 : f32 to vector<1x256xf32>
    %23 = arith.cmpf one, %21, %22 : vector<1x256xf32>
    %c15_i32 = arith.constant 15 : i32
    %24 = tpu.dynamic_rotate %2 by %c15_i32 dim 1 : vector<8x256xf32>, i32 -> vector<8x256xf32>
    %cst_12 = arith.constant 0.000000e+00 : f32
    %25 = vector.shape_cast %23 : vector<1x256xi1> to vector<1x256xi1>
    %26 = vector.broadcast %25 : vector<1x256xi1> to vector<8x256xi1>
    %27 = vector.broadcast %cst_12 : f32 to vector<8x256xf32>
    %28 = arith.select %26, %24, %27 : vector<8x256xi1>, vector<8x256xf32>
    %29 = vector.extract_strided_slice %0 {offsets = [3, 0], sizes = [1, 256], strides = [1, 1]} : vector<8x256xf32> to vector<1x256xf32>
    %cst_13 = arith.constant 0.000000e+00 : f32
    %30 = vector.broadcast %cst_13 : f32 to vector<1x256xf32>
    %31 = arith.cmpf one, %29, %30 : vector<1x256xf32>
    %c1_i32 = arith.constant 1 : i32
    %32 = tpu.dynamic_rotate %2 by %c1_i32 dim 1 : vector<8x256xf32>, i32 -> vector<8x256xf32>
    %cst_14 = arith.constant 0.000000e+00 : f32
    %33 = vector.shape_cast %31 : vector<1x256xi1> to vector<1x256xi1>
    %34 = vector.broadcast %33 : vector<1x256xi1> to vector<8x256xi1>
    %35 = vector.broadcast %cst_14 : f32 to vector<8x256xf32>
    %36 = arith.select %34, %32, %35 : vector<8x256xi1>, vector<8x256xf32>
    %37 = vector.extract_strided_slice %0 {offsets = [4, 0], sizes = [1, 256], strides = [1, 1]} : vector<8x256xf32> to vector<1x256xf32>
    %cst_15 = arith.constant 0.000000e+00 : f32
    %38 = vector.broadcast %cst_15 : f32 to vector<1x256xf32>
    %39 = arith.cmpf one, %37, %38 : vector<1x256xf32>
    %c255_i32 = arith.constant 255 : i32
    %40 = tpu.dynamic_rotate %2 by %c255_i32 dim 1 : vector<8x256xf32>, i32 -> vector<8x256xf32>
    %cst_16 = arith.constant 0.000000e+00 : f32
    %41 = vector.shape_cast %39 : vector<1x256xi1> to vector<1x256xi1>
    %42 = vector.broadcast %41 : vector<1x256xi1> to vector<8x256xi1>
    %43 = vector.broadcast %cst_16 : f32 to vector<8x256xf32>
    %44 = arith.select %42, %40, %43 : vector<8x256xi1>, vector<8x256xf32>
    %45 = vector.extract_strided_slice %0 {offsets = [5, 0], sizes = [1, 256], strides = [1, 1]} : vector<8x256xf32> to vector<1x256xf32>
    %cst_17 = arith.constant 0.000000e+00 : f32
    %46 = vector.broadcast %cst_17 : f32 to vector<1x256xf32>
    %47 = arith.cmpf one, %45, %46 : vector<1x256xf32>
    %c241_i32 = arith.constant 241 : i32
    %48 = tpu.dynamic_rotate %2 by %c241_i32 dim 1 : vector<8x256xf32>, i32 -> vector<8x256xf32>
    %cst_18 = arith.constant 0.000000e+00 : f32
    %49 = vector.shape_cast %47 : vector<1x256xi1> to vector<1x256xi1>
    %50 = vector.broadcast %49 : vector<1x256xi1> to vector<8x256xi1>
    %51 = vector.broadcast %cst_18 : f32 to vector<8x256xf32>
    %52 = arith.select %50, %48, %51 : vector<8x256xi1>, vector<8x256xf32>
    %53 = vector.extract_strided_slice %0 {offsets = [6, 0], sizes = [1, 256], strides = [1, 1]} : vector<8x256xf32> to vector<1x256xf32>
    %cst_19 = arith.constant 0.000000e+00 : f32
    %54 = vector.broadcast %cst_19 : f32 to vector<1x256xf32>
    %55 = arith.cmpf one, %53, %54 : vector<1x256xf32>
    %c240_i32 = arith.constant 240 : i32
    %56 = tpu.dynamic_rotate %2 by %c240_i32 dim 1 : vector<8x256xf32>, i32 -> vector<8x256xf32>
    %cst_20 = arith.constant 0.000000e+00 : f32
    %57 = vector.shape_cast %55 : vector<1x256xi1> to vector<1x256xi1>
    %58 = vector.broadcast %57 : vector<1x256xi1> to vector<8x256xi1>
    %59 = vector.broadcast %cst_20 : f32 to vector<8x256xf32>
    %60 = arith.select %58, %56, %59 : vector<8x256xi1>, vector<8x256xf32>
    %61 = vector.extract_strided_slice %0 {offsets = [7, 0], sizes = [1, 256], strides = [1, 1]} : vector<8x256xf32> to vector<1x256xf32>
    %cst_21 = arith.constant 0.000000e+00 : f32
    %62 = vector.broadcast %cst_21 : f32 to vector<1x256xf32>
    %63 = arith.cmpf one, %61, %62 : vector<1x256xf32>
    %c239_i32 = arith.constant 239 : i32
    %64 = tpu.dynamic_rotate %2 by %c239_i32 dim 1 : vector<8x256xf32>, i32 -> vector<8x256xf32>
    %cst_22 = arith.constant 0.000000e+00 : f32
    %65 = vector.shape_cast %63 : vector<1x256xi1> to vector<1x256xi1>
    %66 = vector.broadcast %65 : vector<1x256xi1> to vector<8x256xi1>
    %67 = vector.broadcast %cst_22 : f32 to vector<8x256xf32>
    %68 = arith.select %66, %64, %67 : vector<8x256xi1>, vector<8x256xf32>
    %69 = tpu.concatenate %12, %20, %28, %36, %2, %44, %52, %60, %68 in 0 : vector<8x256xf32>, vector<8x256xf32>, vector<8x256xf32>, vector<8x256xf32>, vector<8x256xf32>, vector<8x256xf32>, vector<8x256xf32>, vector<8x256xf32>, vector<8x256xf32> -> vector<72x256xf32>
    %cst_23 = arith.constant dense<0.000000e+00> : vector<8x256xf32>
    %70 = tpu.matmul %3, %69, %cst_23 {dimension_numbers = #tpu.dot_dimension_numbers<[1], [0], [0], [1], [0, 0, 1, 1], [], []>} : vector<8x72xf32>, vector<72x256xf32>, vector<8x256xf32> -> vector<8x256xf32>
    %71 = vector.extract_strided_slice %4 {offsets = [0, 0], sizes = [8, 1], strides = [1, 1]} : vector<8x2xf32> to vector<8x1xf32>
    %72 = vector.broadcast %71 : vector<8x1xf32> to vector<8x256xf32>
    %73 = arith.mulf %70, %72 : vector<8x256xf32>
    %74 = vector.extract_strided_slice %4 {offsets = [0, 1], sizes = [8, 1], strides = [1, 1]} : vector<8x2xf32> to vector<8x1xf32>
    %75 = vector.broadcast %74 : vector<8x1xf32> to vector<8x256xf32>
    %76 = arith.addf %73, %75 : vector<8x256xf32>
    %cst_24 = arith.constant 0.000000e+00 : f32
    %77 = vector.broadcast %cst_24 : f32 to vector<8x256xf32>
    %78 = arith.maximumf %76, %77 : vector<8x256xf32>
    %c0_25 = arith.constant 0 : index
    %c0_26 = arith.constant 0 : index
    %79 = vector.load %arg5[%c0_25, %c0_26] : memref<8x72xf32, #tpu.memory_space<vmem>>, vector<8x72xf32>
    %c0_27 = arith.constant 0 : index
    %c0_28 = arith.constant 0 : index
    %80 = vector.load %arg6[%c0_27, %c0_28] : memref<8x2xf32, #tpu.memory_space<vmem>>, vector<8x2xf32>
    %81 = vector.extract_strided_slice %0 {offsets = [0, 0], sizes = [1, 256], strides = [1, 1]} : vector<8x256xf32> to vector<1x256xf32>
    %cst_29 = arith.constant 0.000000e+00 : f32
    %82 = vector.broadcast %cst_29 : f32 to vector<1x256xf32>
    %83 = arith.cmpf one, %81, %82 : vector<1x256xf32>
    %c17_i32_30 = arith.constant 17 : i32
    %84 = tpu.dynamic_rotate %2 by %c17_i32_30 dim 1 : vector<8x256xf32>, i32 -> vector<8x256xf32>
    %cst_31 = arith.constant 0.000000e+00 : f32
    %85 = vector.shape_cast %83 : vector<1x256xi1> to vector<1x256xi1>
    %86 = vector.broadcast %85 : vector<1x256xi1> to vector<8x256xi1>
    %87 = vector.broadcast %cst_31 : f32 to vector<8x256xf32>
    %88 = arith.select %86, %84, %87 : vector<8x256xi1>, vector<8x256xf32>
    %89 = vector.extract_strided_slice %0 {offsets = [1, 0], sizes = [1, 256], strides = [1, 1]} : vector<8x256xf32> to vector<1x256xf32>
    %cst_32 = arith.constant 0.000000e+00 : f32
    %90 = vector.broadcast %cst_32 : f32 to vector<1x256xf32>
    %91 = arith.cmpf one, %89, %90 : vector<1x256xf32>
    %c16_i32_33 = arith.constant 16 : i32
    %92 = tpu.dynamic_rotate %2 by %c16_i32_33 dim 1 : vector<8x256xf32>, i32 -> vector<8x256xf32>
    %cst_34 = arith.constant 0.000000e+00 : f32
    %93 = vector.shape_cast %91 : vector<1x256xi1> to vector<1x256xi1>
    %94 = vector.broadcast %93 : vector<1x256xi1> to vector<8x256xi1>
    %95 = vector.broadcast %cst_34 : f32 to vector<8x256xf32>
    %96 = arith.select %94, %92, %95 : vector<8x256xi1>, vector<8x256xf32>
    %97 = vector.extract_strided_slice %0 {offsets = [2, 0], sizes = [1, 256], strides = [1, 1]} : vector<8x256xf32> to vector<1x256xf32>
    %cst_35 = arith.constant 0.000000e+00 : f32
    %98 = vector.broadcast %cst_35 : f32 to vector<1x256xf32>
    %99 = arith.cmpf one, %97, %98 : vector<1x256xf32>
    %c15_i32_36 = arith.constant 15 : i32
    %100 = tpu.dynamic_rotate %2 by %c15_i32_36 dim 1 : vector<8x256xf32>, i32 -> vector<8x256xf32>
    %cst_37 = arith.constant 0.000000e+00 : f32
    %101 = vector.shape_cast %99 : vector<1x256xi1> to vector<1x256xi1>
    %102 = vector.broadcast %101 : vector<1x256xi1> to vector<8x256xi1>
    %103 = vector.broadcast %cst_37 : f32 to vector<8x256xf32>
    %104 = arith.select %102, %100, %103 : vector<8x256xi1>, vector<8x256xf32>
    %105 = vector.extract_strided_slice %0 {offsets = [3, 0], sizes = [1, 256], strides = [1, 1]} : vector<8x256xf32> to vector<1x256xf32>
    %cst_38 = arith.constant 0.000000e+00 : f32
    %106 = vector.broadcast %cst_38 : f32 to vector<1x256xf32>
    %107 = arith.cmpf one, %105, %106 : vector<1x256xf32>
    %c1_i32_39 = arith.constant 1 : i32
    %108 = tpu.dynamic_rotate %2 by %c1_i32_39 dim 1 : vector<8x256xf32>, i32 -> vector<8x256xf32>
    %cst_40 = arith.constant 0.000000e+00 : f32
    %109 = vector.shape_cast %107 : vector<1x256xi1> to vector<1x256xi1>
    %110 = vector.broadcast %109 : vector<1x256xi1> to vector<8x256xi1>
    %111 = vector.broadcast %cst_40 : f32 to vector<8x256xf32>
    %112 = arith.select %110, %108, %111 : vector<8x256xi1>, vector<8x256xf32>
    %113 = vector.extract_strided_slice %0 {offsets = [4, 0], sizes = [1, 256], strides = [1, 1]} : vector<8x256xf32> to vector<1x256xf32>
    %cst_41 = arith.constant 0.000000e+00 : f32
    %114 = vector.broadcast %cst_41 : f32 to vector<1x256xf32>
    %115 = arith.cmpf one, %113, %114 : vector<1x256xf32>
    %c255_i32_42 = arith.constant 255 : i32
    %116 = tpu.dynamic_rotate %2 by %c255_i32_42 dim 1 : vector<8x256xf32>, i32 -> vector<8x256xf32>
    %cst_43 = arith.constant 0.000000e+00 : f32
    %117 = vector.shape_cast %115 : vector<1x256xi1> to vector<1x256xi1>
    %118 = vector.broadcast %117 : vector<1x256xi1> to vector<8x256xi1>
    %119 = vector.broadcast %cst_43 : f32 to vector<8x256xf32>
    %120 = arith.select %118, %116, %119 : vector<8x256xi1>, vector<8x256xf32>
    %121 = vector.extract_strided_slice %0 {offsets = [5, 0], sizes = [1, 256], strides = [1, 1]} : vector<8x256xf32> to vector<1x256xf32>
    %cst_44 = arith.constant 0.000000e+00 : f32
    %122 = vector.broadcast %cst_44 : f32 to vector<1x256xf32>
    %123 = arith.cmpf one, %121, %122 : vector<1x256xf32>
    %c241_i32_45 = arith.constant 241 : i32
    %124 = tpu.dynamic_rotate %2 by %c241_i32_45 dim 1 : vector<8x256xf32>, i32 -> vector<8x256xf32>
    %cst_46 = arith.constant 0.000000e+00 : f32
    %125 = vector.shape_cast %123 : vector<1x256xi1> to vector<1x256xi1>
    %126 = vector.broadcast %125 : vector<1x256xi1> to vector<8x256xi1>
    %127 = vector.broadcast %cst_46 : f32 to vector<8x256xf32>
    %128 = arith.select %126, %124, %127 : vector<8x256xi1>, vector<8x256xf32>
    %129 = vector.extract_strided_slice %0 {offsets = [6, 0], sizes = [1, 256], strides = [1, 1]} : vector<8x256xf32> to vector<1x256xf32>
    %cst_47 = arith.constant 0.000000e+00 : f32
    %130 = vector.broadcast %cst_47 : f32 to vector<1x256xf32>
    %131 = arith.cmpf one, %129, %130 : vector<1x256xf32>
    %c240_i32_48 = arith.constant 240 : i32
    %132 = tpu.dynamic_rotate %2 by %c240_i32_48 dim 1 : vector<8x256xf32>, i32 -> vector<8x256xf32>
    %cst_49 = arith.constant 0.000000e+00 : f32
    %133 = vector.shape_cast %131 : vector<1x256xi1> to vector<1x256xi1>
    %134 = vector.broadcast %133 : vector<1x256xi1> to vector<8x256xi1>
    %135 = vector.broadcast %cst_49 : f32 to vector<8x256xf32>
    %136 = arith.select %134, %132, %135 : vector<8x256xi1>, vector<8x256xf32>
    %137 = vector.extract_strided_slice %0 {offsets = [7, 0], sizes = [1, 256], strides = [1, 1]} : vector<8x256xf32> to vector<1x256xf32>
    %cst_50 = arith.constant 0.000000e+00 : f32
    %138 = vector.broadcast %cst_50 : f32 to vector<1x256xf32>
    %139 = arith.cmpf one, %137, %138 : vector<1x256xf32>
    %c239_i32_51 = arith.constant 239 : i32
    %140 = tpu.dynamic_rotate %2 by %c239_i32_51 dim 1 : vector<8x256xf32>, i32 -> vector<8x256xf32>
    %cst_52 = arith.constant 0.000000e+00 : f32
    %141 = vector.shape_cast %139 : vector<1x256xi1> to vector<1x256xi1>
    %142 = vector.broadcast %141 : vector<1x256xi1> to vector<8x256xi1>
    %143 = vector.broadcast %cst_52 : f32 to vector<8x256xf32>
    %144 = arith.select %142, %140, %143 : vector<8x256xi1>, vector<8x256xf32>
    %145 = tpu.concatenate %88, %96, %104, %112, %2, %120, %128, %136, %144 in 0 : vector<8x256xf32>, vector<8x256xf32>, vector<8x256xf32>, vector<8x256xf32>, vector<8x256xf32>, vector<8x256xf32>, vector<8x256xf32>, vector<8x256xf32>, vector<8x256xf32> -> vector<72x256xf32>
    %cst_53 = arith.constant dense<0.000000e+00> : vector<8x256xf32>
    %146 = tpu.matmul %79, %145, %cst_53 {dimension_numbers = #tpu.dot_dimension_numbers<[1], [0], [0], [1], [0, 0, 1, 1], [], []>} : vector<8x72xf32>, vector<72x256xf32>, vector<8x256xf32> -> vector<8x256xf32>
    %147 = vector.extract_strided_slice %80 {offsets = [0, 0], sizes = [8, 1], strides = [1, 1]} : vector<8x2xf32> to vector<8x1xf32>
    %148 = vector.broadcast %147 : vector<8x1xf32> to vector<8x256xf32>
    %149 = arith.mulf %146, %148 : vector<8x256xf32>
    %150 = vector.extract_strided_slice %80 {offsets = [0, 1], sizes = [8, 1], strides = [1, 1]} : vector<8x2xf32> to vector<8x1xf32>
    %151 = vector.broadcast %150 : vector<8x1xf32> to vector<8x256xf32>
    %152 = arith.addf %149, %151 : vector<8x256xf32>
    %cst_54 = arith.constant 0.000000e+00 : f32
    %153 = vector.broadcast %cst_54 : f32 to vector<8x256xf32>
    %154 = arith.maximumf %152, %153 : vector<8x256xf32>
    %c0_55 = arith.constant 0 : index
    %c0_56 = arith.constant 0 : index
    %155 = vector.load %arg7[%c0_55, %c0_56] : memref<8x72xf32, #tpu.memory_space<vmem>>, vector<8x72xf32>
    %c0_57 = arith.constant 0 : index
    %c0_58 = arith.constant 0 : index
    %156 = vector.load %arg8[%c0_57, %c0_58] : memref<8x2xf32, #tpu.memory_space<vmem>>, vector<8x2xf32>
    %157 = vector.extract_strided_slice %0 {offsets = [0, 0], sizes = [1, 256], strides = [1, 1]} : vector<8x256xf32> to vector<1x256xf32>
    %cst_59 = arith.constant 0.000000e+00 : f32
    %158 = vector.broadcast %cst_59 : f32 to vector<1x256xf32>
    %159 = arith.cmpf one, %157, %158 : vector<1x256xf32>
    %c17_i32_60 = arith.constant 17 : i32
    %160 = tpu.dynamic_rotate %2 by %c17_i32_60 dim 1 : vector<8x256xf32>, i32 -> vector<8x256xf32>
    %cst_61 = arith.constant 0.000000e+00 : f32
    %161 = vector.shape_cast %159 : vector<1x256xi1> to vector<1x256xi1>
    %162 = vector.broadcast %161 : vector<1x256xi1> to vector<8x256xi1>
    %163 = vector.broadcast %cst_61 : f32 to vector<8x256xf32>
    %164 = arith.select %162, %160, %163 : vector<8x256xi1>, vector<8x256xf32>
    %165 = vector.extract_strided_slice %0 {offsets = [1, 0], sizes = [1, 256], strides = [1, 1]} : vector<8x256xf32> to vector<1x256xf32>
    %cst_62 = arith.constant 0.000000e+00 : f32
    %166 = vector.broadcast %cst_62 : f32 to vector<1x256xf32>
    %167 = arith.cmpf one, %165, %166 : vector<1x256xf32>
    %c16_i32_63 = arith.constant 16 : i32
    %168 = tpu.dynamic_rotate %2 by %c16_i32_63 dim 1 : vector<8x256xf32>, i32 -> vector<8x256xf32>
    %cst_64 = arith.constant 0.000000e+00 : f32
    %169 = vector.shape_cast %167 : vector<1x256xi1> to vector<1x256xi1>
    %170 = vector.broadcast %169 : vector<1x256xi1> to vector<8x256xi1>
    %171 = vector.broadcast %cst_64 : f32 to vector<8x256xf32>
    %172 = arith.select %170, %168, %171 : vector<8x256xi1>, vector<8x256xf32>
    %173 = vector.extract_strided_slice %0 {offsets = [2, 0], sizes = [1, 256], strides = [1, 1]} : vector<8x256xf32> to vector<1x256xf32>
    %cst_65 = arith.constant 0.000000e+00 : f32
    %174 = vector.broadcast %cst_65 : f32 to vector<1x256xf32>
    %175 = arith.cmpf one, %173, %174 : vector<1x256xf32>
    %c15_i32_66 = arith.constant 15 : i32
    %176 = tpu.dynamic_rotate %2 by %c15_i32_66 dim 1 : vector<8x256xf32>, i32 -> vector<8x256xf32>
    %cst_67 = arith.constant 0.000000e+00 : f32
    %177 = vector.shape_cast %175 : vector<1x256xi1> to vector<1x256xi1>
    %178 = vector.broadcast %177 : vector<1x256xi1> to vector<8x256xi1>
    %179 = vector.broadcast %cst_67 : f32 to vector<8x256xf32>
    %180 = arith.select %178, %176, %179 : vector<8x256xi1>, vector<8x256xf32>
    %181 = vector.extract_strided_slice %0 {offsets = [3, 0], sizes = [1, 256], strides = [1, 1]} : vector<8x256xf32> to vector<1x256xf32>
    %cst_68 = arith.constant 0.000000e+00 : f32
    %182 = vector.broadcast %cst_68 : f32 to vector<1x256xf32>
    %183 = arith.cmpf one, %181, %182 : vector<1x256xf32>
    %c1_i32_69 = arith.constant 1 : i32
    %184 = tpu.dynamic_rotate %2 by %c1_i32_69 dim 1 : vector<8x256xf32>, i32 -> vector<8x256xf32>
    %cst_70 = arith.constant 0.000000e+00 : f32
    %185 = vector.shape_cast %183 : vector<1x256xi1> to vector<1x256xi1>
    %186 = vector.broadcast %185 : vector<1x256xi1> to vector<8x256xi1>
    %187 = vector.broadcast %cst_70 : f32 to vector<8x256xf32>
    %188 = arith.select %186, %184, %187 : vector<8x256xi1>, vector<8x256xf32>
    %189 = vector.extract_strided_slice %0 {offsets = [4, 0], sizes = [1, 256], strides = [1, 1]} : vector<8x256xf32> to vector<1x256xf32>
    %cst_71 = arith.constant 0.000000e+00 : f32
    %190 = vector.broadcast %cst_71 : f32 to vector<1x256xf32>
    %191 = arith.cmpf one, %189, %190 : vector<1x256xf32>
    %c255_i32_72 = arith.constant 255 : i32
    %192 = tpu.dynamic_rotate %2 by %c255_i32_72 dim 1 : vector<8x256xf32>, i32 -> vector<8x256xf32>
    %cst_73 = arith.constant 0.000000e+00 : f32
    %193 = vector.shape_cast %191 : vector<1x256xi1> to vector<1x256xi1>
    %194 = vector.broadcast %193 : vector<1x256xi1> to vector<8x256xi1>
    %195 = vector.broadcast %cst_73 : f32 to vector<8x256xf32>
    %196 = arith.select %194, %192, %195 : vector<8x256xi1>, vector<8x256xf32>
    %197 = vector.extract_strided_slice %0 {offsets = [5, 0], sizes = [1, 256], strides = [1, 1]} : vector<8x256xf32> to vector<1x256xf32>
    %cst_74 = arith.constant 0.000000e+00 : f32
    %198 = vector.broadcast %cst_74 : f32 to vector<1x256xf32>
    %199 = arith.cmpf one, %197, %198 : vector<1x256xf32>
    %c241_i32_75 = arith.constant 241 : i32
    %200 = tpu.dynamic_rotate %2 by %c241_i32_75 dim 1 : vector<8x256xf32>, i32 -> vector<8x256xf32>
    %cst_76 = arith.constant 0.000000e+00 : f32
    %201 = vector.shape_cast %199 : vector<1x256xi1> to vector<1x256xi1>
    %202 = vector.broadcast %201 : vector<1x256xi1> to vector<8x256xi1>
    %203 = vector.broadcast %cst_76 : f32 to vector<8x256xf32>
    %204 = arith.select %202, %200, %203 : vector<8x256xi1>, vector<8x256xf32>
    %205 = vector.extract_strided_slice %0 {offsets = [6, 0], sizes = [1, 256], strides = [1, 1]} : vector<8x256xf32> to vector<1x256xf32>
    %cst_77 = arith.constant 0.000000e+00 : f32
    %206 = vector.broadcast %cst_77 : f32 to vector<1x256xf32>
    %207 = arith.cmpf one, %205, %206 : vector<1x256xf32>
    %c240_i32_78 = arith.constant 240 : i32
    %208 = tpu.dynamic_rotate %2 by %c240_i32_78 dim 1 : vector<8x256xf32>, i32 -> vector<8x256xf32>
    %cst_79 = arith.constant 0.000000e+00 : f32
    %209 = vector.shape_cast %207 : vector<1x256xi1> to vector<1x256xi1>
    %210 = vector.broadcast %209 : vector<1x256xi1> to vector<8x256xi1>
    %211 = vector.broadcast %cst_79 : f32 to vector<8x256xf32>
    %212 = arith.select %210, %208, %211 : vector<8x256xi1>, vector<8x256xf32>
    %213 = vector.extract_strided_slice %0 {offsets = [7, 0], sizes = [1, 256], strides = [1, 1]} : vector<8x256xf32> to vector<1x256xf32>
    %cst_80 = arith.constant 0.000000e+00 : f32
    %214 = vector.broadcast %cst_80 : f32 to vector<1x256xf32>
    %215 = arith.cmpf one, %213, %214 : vector<1x256xf32>
    %c239_i32_81 = arith.constant 239 : i32
    %216 = tpu.dynamic_rotate %2 by %c239_i32_81 dim 1 : vector<8x256xf32>, i32 -> vector<8x256xf32>
    %cst_82 = arith.constant 0.000000e+00 : f32
    %217 = vector.shape_cast %215 : vector<1x256xi1> to vector<1x256xi1>
    %218 = vector.broadcast %217 : vector<1x256xi1> to vector<8x256xi1>
    %219 = vector.broadcast %cst_82 : f32 to vector<8x256xf32>
    %220 = arith.select %218, %216, %219 : vector<8x256xi1>, vector<8x256xf32>
    %221 = tpu.concatenate %164, %172, %180, %188, %2, %196, %204, %212, %220 in 0 : vector<8x256xf32>, vector<8x256xf32>, vector<8x256xf32>, vector<8x256xf32>, vector<8x256xf32>, vector<8x256xf32>, vector<8x256xf32>, vector<8x256xf32>, vector<8x256xf32> -> vector<72x256xf32>
    %cst_83 = arith.constant dense<0.000000e+00> : vector<8x256xf32>
    %222 = tpu.matmul %155, %221, %cst_83 {dimension_numbers = #tpu.dot_dimension_numbers<[1], [0], [0], [1], [0, 0, 1, 1], [], []>} : vector<8x72xf32>, vector<72x256xf32>, vector<8x256xf32> -> vector<8x256xf32>
    %223 = vector.extract_strided_slice %156 {offsets = [0, 0], sizes = [8, 1], strides = [1, 1]} : vector<8x2xf32> to vector<8x1xf32>
    %224 = vector.broadcast %223 : vector<8x1xf32> to vector<8x256xf32>
    %225 = arith.mulf %222, %224 : vector<8x256xf32>
    %226 = vector.extract_strided_slice %156 {offsets = [0, 1], sizes = [8, 1], strides = [1, 1]} : vector<8x2xf32> to vector<8x1xf32>
    %227 = vector.broadcast %226 : vector<8x1xf32> to vector<8x256xf32>
    %228 = arith.addf %225, %227 : vector<8x256xf32>
    %cst_84 = arith.constant 0.000000e+00 : f32
    %229 = vector.broadcast %cst_84 : f32 to vector<8x256xf32>
    %230 = arith.maximumf %228, %229 : vector<8x256xf32>
    %c0_85 = arith.constant 0 : index
    %c0_86 = arith.constant 0 : index
    %231 = vector.load %arg9[%c0_85, %c0_86] : memref<8x72xf32, #tpu.memory_space<vmem>>, vector<8x72xf32>
    %c0_87 = arith.constant 0 : index
    %c0_88 = arith.constant 0 : index
    %232 = vector.load %arg10[%c0_87, %c0_88] : memref<8x2xf32, #tpu.memory_space<vmem>>, vector<8x2xf32>
    %233 = vector.extract_strided_slice %0 {offsets = [0, 0], sizes = [1, 256], strides = [1, 1]} : vector<8x256xf32> to vector<1x256xf32>
    %cst_89 = arith.constant 0.000000e+00 : f32
    %234 = vector.broadcast %cst_89 : f32 to vector<1x256xf32>
    %235 = arith.cmpf one, %233, %234 : vector<1x256xf32>
    %c17_i32_90 = arith.constant 17 : i32
    %236 = tpu.dynamic_rotate %230 by %c17_i32_90 dim 1 : vector<8x256xf32>, i32 -> vector<8x256xf32>
    %cst_91 = arith.constant 0.000000e+00 : f32
    %237 = vector.shape_cast %235 : vector<1x256xi1> to vector<1x256xi1>
    %238 = vector.broadcast %237 : vector<1x256xi1> to vector<8x256xi1>
    %239 = vector.broadcast %cst_91 : f32 to vector<8x256xf32>
    %240 = arith.select %238, %236, %239 : vector<8x256xi1>, vector<8x256xf32>
    %241 = vector.extract_strided_slice %0 {offsets = [1, 0], sizes = [1, 256], strides = [1, 1]} : vector<8x256xf32> to vector<1x256xf32>
    %cst_92 = arith.constant 0.000000e+00 : f32
    %242 = vector.broadcast %cst_92 : f32 to vector<1x256xf32>
    %243 = arith.cmpf one, %241, %242 : vector<1x256xf32>
    %c16_i32_93 = arith.constant 16 : i32
    %244 = tpu.dynamic_rotate %230 by %c16_i32_93 dim 1 : vector<8x256xf32>, i32 -> vector<8x256xf32>
    %cst_94 = arith.constant 0.000000e+00 : f32
    %245 = vector.shape_cast %243 : vector<1x256xi1> to vector<1x256xi1>
    %246 = vector.broadcast %245 : vector<1x256xi1> to vector<8x256xi1>
    %247 = vector.broadcast %cst_94 : f32 to vector<8x256xf32>
    %248 = arith.select %246, %244, %247 : vector<8x256xi1>, vector<8x256xf32>
    %249 = vector.extract_strided_slice %0 {offsets = [2, 0], sizes = [1, 256], strides = [1, 1]} : vector<8x256xf32> to vector<1x256xf32>
    %cst_95 = arith.constant 0.000000e+00 : f32
    %250 = vector.broadcast %cst_95 : f32 to vector<1x256xf32>
    %251 = arith.cmpf one, %249, %250 : vector<1x256xf32>
    %c15_i32_96 = arith.constant 15 : i32
    %252 = tpu.dynamic_rotate %230 by %c15_i32_96 dim 1 : vector<8x256xf32>, i32 -> vector<8x256xf32>
    %cst_97 = arith.constant 0.000000e+00 : f32
    %253 = vector.shape_cast %251 : vector<1x256xi1> to vector<1x256xi1>
    %254 = vector.broadcast %253 : vector<1x256xi1> to vector<8x256xi1>
    %255 = vector.broadcast %cst_97 : f32 to vector<8x256xf32>
    %256 = arith.select %254, %252, %255 : vector<8x256xi1>, vector<8x256xf32>
    %257 = vector.extract_strided_slice %0 {offsets = [3, 0], sizes = [1, 256], strides = [1, 1]} : vector<8x256xf32> to vector<1x256xf32>
    %cst_98 = arith.constant 0.000000e+00 : f32
    %258 = vector.broadcast %cst_98 : f32 to vector<1x256xf32>
    %259 = arith.cmpf one, %257, %258 : vector<1x256xf32>
    %c1_i32_99 = arith.constant 1 : i32
    %260 = tpu.dynamic_rotate %230 by %c1_i32_99 dim 1 : vector<8x256xf32>, i32 -> vector<8x256xf32>
    %cst_100 = arith.constant 0.000000e+00 : f32
    %261 = vector.shape_cast %259 : vector<1x256xi1> to vector<1x256xi1>
    %262 = vector.broadcast %261 : vector<1x256xi1> to vector<8x256xi1>
    %263 = vector.broadcast %cst_100 : f32 to vector<8x256xf32>
    %264 = arith.select %262, %260, %263 : vector<8x256xi1>, vector<8x256xf32>
    %265 = vector.extract_strided_slice %0 {offsets = [4, 0], sizes = [1, 256], strides = [1, 1]} : vector<8x256xf32> to vector<1x256xf32>
    %cst_101 = arith.constant 0.000000e+00 : f32
    %266 = vector.broadcast %cst_101 : f32 to vector<1x256xf32>
    %267 = arith.cmpf one, %265, %266 : vector<1x256xf32>
    %c255_i32_102 = arith.constant 255 : i32
    %268 = tpu.dynamic_rotate %230 by %c255_i32_102 dim 1 : vector<8x256xf32>, i32 -> vector<8x256xf32>
    %cst_103 = arith.constant 0.000000e+00 : f32
    %269 = vector.shape_cast %267 : vector<1x256xi1> to vector<1x256xi1>
    %270 = vector.broadcast %269 : vector<1x256xi1> to vector<8x256xi1>
    %271 = vector.broadcast %cst_103 : f32 to vector<8x256xf32>
    %272 = arith.select %270, %268, %271 : vector<8x256xi1>, vector<8x256xf32>
    %273 = vector.extract_strided_slice %0 {offsets = [5, 0], sizes = [1, 256], strides = [1, 1]} : vector<8x256xf32> to vector<1x256xf32>
    %cst_104 = arith.constant 0.000000e+00 : f32
    %274 = vector.broadcast %cst_104 : f32 to vector<1x256xf32>
    %275 = arith.cmpf one, %273, %274 : vector<1x256xf32>
    %c241_i32_105 = arith.constant 241 : i32
    %276 = tpu.dynamic_rotate %230 by %c241_i32_105 dim 1 : vector<8x256xf32>, i32 -> vector<8x256xf32>
    %cst_106 = arith.constant 0.000000e+00 : f32
    %277 = vector.shape_cast %275 : vector<1x256xi1> to vector<1x256xi1>
    %278 = vector.broadcast %277 : vector<1x256xi1> to vector<8x256xi1>
    %279 = vector.broadcast %cst_106 : f32 to vector<8x256xf32>
    %280 = arith.select %278, %276, %279 : vector<8x256xi1>, vector<8x256xf32>
    %281 = vector.extract_strided_slice %0 {offsets = [6, 0], sizes = [1, 256], strides = [1, 1]} : vector<8x256xf32> to vector<1x256xf32>
    %cst_107 = arith.constant 0.000000e+00 : f32
    %282 = vector.broadcast %cst_107 : f32 to vector<1x256xf32>
    %283 = arith.cmpf one, %281, %282 : vector<1x256xf32>
    %c240_i32_108 = arith.constant 240 : i32
    %284 = tpu.dynamic_rotate %230 by %c240_i32_108 dim 1 : vector<8x256xf32>, i32 -> vector<8x256xf32>
    %cst_109 = arith.constant 0.000000e+00 : f32
    %285 = vector.shape_cast %283 : vector<1x256xi1> to vector<1x256xi1>
    %286 = vector.broadcast %285 : vector<1x256xi1> to vector<8x256xi1>
    %287 = vector.broadcast %cst_109 : f32 to vector<8x256xf32>
    %288 = arith.select %286, %284, %287 : vector<8x256xi1>, vector<8x256xf32>
    %289 = vector.extract_strided_slice %0 {offsets = [7, 0], sizes = [1, 256], strides = [1, 1]} : vector<8x256xf32> to vector<1x256xf32>
    %cst_110 = arith.constant 0.000000e+00 : f32
    %290 = vector.broadcast %cst_110 : f32 to vector<1x256xf32>
    %291 = arith.cmpf one, %289, %290 : vector<1x256xf32>
    %c239_i32_111 = arith.constant 239 : i32
    %292 = tpu.dynamic_rotate %230 by %c239_i32_111 dim 1 : vector<8x256xf32>, i32 -> vector<8x256xf32>
    %cst_112 = arith.constant 0.000000e+00 : f32
    %293 = vector.shape_cast %291 : vector<1x256xi1> to vector<1x256xi1>
    %294 = vector.broadcast %293 : vector<1x256xi1> to vector<8x256xi1>
    %295 = vector.broadcast %cst_112 : f32 to vector<8x256xf32>
    %296 = arith.select %294, %292, %295 : vector<8x256xi1>, vector<8x256xf32>
    %297 = tpu.concatenate %240, %248, %256, %264, %230, %272, %280, %288, %296 in 0 : vector<8x256xf32>, vector<8x256xf32>, vector<8x256xf32>, vector<8x256xf32>, vector<8x256xf32>, vector<8x256xf32>, vector<8x256xf32>, vector<8x256xf32>, vector<8x256xf32> -> vector<72x256xf32>
    %cst_113 = arith.constant dense<0.000000e+00> : vector<8x256xf32>
    %298 = tpu.matmul %231, %297, %cst_113 {dimension_numbers = #tpu.dot_dimension_numbers<[1], [0], [0], [1], [0, 0, 1, 1], [], []>} : vector<8x72xf32>, vector<72x256xf32>, vector<8x256xf32> -> vector<8x256xf32>
    %299 = vector.extract_strided_slice %232 {offsets = [0, 0], sizes = [8, 1], strides = [1, 1]} : vector<8x2xf32> to vector<8x1xf32>
    %300 = vector.broadcast %299 : vector<8x1xf32> to vector<8x256xf32>
    %301 = arith.mulf %298, %300 : vector<8x256xf32>
    %302 = vector.extract_strided_slice %232 {offsets = [0, 1], sizes = [8, 1], strides = [1, 1]} : vector<8x2xf32> to vector<8x1xf32>
    %303 = vector.broadcast %302 : vector<8x1xf32> to vector<8x256xf32>
    %304 = arith.addf %301, %303 : vector<8x256xf32>
    %cst_114 = arith.constant 0.000000e+00 : f32
    %305 = vector.broadcast %cst_114 : f32 to vector<8x256xf32>
    %306 = arith.maximumf %304, %305 : vector<8x256xf32>
    %c0_115 = arith.constant 0 : index
    %c0_116 = arith.constant 0 : index
    %307 = vector.load %arg11[%c0_115, %c0_116] : memref<8x72xf32, #tpu.memory_space<vmem>>, vector<8x72xf32>
    %c0_117 = arith.constant 0 : index
    %c0_118 = arith.constant 0 : index
    %308 = vector.load %arg12[%c0_117, %c0_118] : memref<8x2xf32, #tpu.memory_space<vmem>>, vector<8x2xf32>
    %309 = arith.addf %154, %306 : vector<8x256xf32>
    %310 = vector.extract_strided_slice %0 {offsets = [0, 0], sizes = [1, 256], strides = [1, 1]} : vector<8x256xf32> to vector<1x256xf32>
    %cst_119 = arith.constant 0.000000e+00 : f32
    %311 = vector.broadcast %cst_119 : f32 to vector<1x256xf32>
    %312 = arith.cmpf one, %310, %311 : vector<1x256xf32>
    %c17_i32_120 = arith.constant 17 : i32
    %313 = tpu.dynamic_rotate %309 by %c17_i32_120 dim 1 : vector<8x256xf32>, i32 -> vector<8x256xf32>
    %cst_121 = arith.constant 0.000000e+00 : f32
    %314 = vector.shape_cast %312 : vector<1x256xi1> to vector<1x256xi1>
    %315 = vector.broadcast %314 : vector<1x256xi1> to vector<8x256xi1>
    %316 = vector.broadcast %cst_121 : f32 to vector<8x256xf32>
    %317 = arith.select %315, %313, %316 : vector<8x256xi1>, vector<8x256xf32>
    %318 = vector.extract_strided_slice %0 {offsets = [1, 0], sizes = [1, 256], strides = [1, 1]} : vector<8x256xf32> to vector<1x256xf32>
    %cst_122 = arith.constant 0.000000e+00 : f32
    %319 = vector.broadcast %cst_122 : f32 to vector<1x256xf32>
    %320 = arith.cmpf one, %318, %319 : vector<1x256xf32>
    %c16_i32_123 = arith.constant 16 : i32
    %321 = tpu.dynamic_rotate %309 by %c16_i32_123 dim 1 : vector<8x256xf32>, i32 -> vector<8x256xf32>
    %cst_124 = arith.constant 0.000000e+00 : f32
    %322 = vector.shape_cast %320 : vector<1x256xi1> to vector<1x256xi1>
    %323 = vector.broadcast %322 : vector<1x256xi1> to vector<8x256xi1>
    %324 = vector.broadcast %cst_124 : f32 to vector<8x256xf32>
    %325 = arith.select %323, %321, %324 : vector<8x256xi1>, vector<8x256xf32>
    %326 = vector.extract_strided_slice %0 {offsets = [2, 0], sizes = [1, 256], strides = [1, 1]} : vector<8x256xf32> to vector<1x256xf32>
    %cst_125 = arith.constant 0.000000e+00 : f32
    %327 = vector.broadcast %cst_125 : f32 to vector<1x256xf32>
    %328 = arith.cmpf one, %326, %327 : vector<1x256xf32>
    %c15_i32_126 = arith.constant 15 : i32
    %329 = tpu.dynamic_rotate %309 by %c15_i32_126 dim 1 : vector<8x256xf32>, i32 -> vector<8x256xf32>
    %cst_127 = arith.constant 0.000000e+00 : f32
    %330 = vector.shape_cast %328 : vector<1x256xi1> to vector<1x256xi1>
    %331 = vector.broadcast %330 : vector<1x256xi1> to vector<8x256xi1>
    %332 = vector.broadcast %cst_127 : f32 to vector<8x256xf32>
    %333 = arith.select %331, %329, %332 : vector<8x256xi1>, vector<8x256xf32>
    %334 = vector.extract_strided_slice %0 {offsets = [3, 0], sizes = [1, 256], strides = [1, 1]} : vector<8x256xf32> to vector<1x256xf32>
    %cst_128 = arith.constant 0.000000e+00 : f32
    %335 = vector.broadcast %cst_128 : f32 to vector<1x256xf32>
    %336 = arith.cmpf one, %334, %335 : vector<1x256xf32>
    %c1_i32_129 = arith.constant 1 : i32
    %337 = tpu.dynamic_rotate %309 by %c1_i32_129 dim 1 : vector<8x256xf32>, i32 -> vector<8x256xf32>
    %cst_130 = arith.constant 0.000000e+00 : f32
    %338 = vector.shape_cast %336 : vector<1x256xi1> to vector<1x256xi1>
    %339 = vector.broadcast %338 : vector<1x256xi1> to vector<8x256xi1>
    %340 = vector.broadcast %cst_130 : f32 to vector<8x256xf32>
    %341 = arith.select %339, %337, %340 : vector<8x256xi1>, vector<8x256xf32>
    %342 = vector.extract_strided_slice %0 {offsets = [4, 0], sizes = [1, 256], strides = [1, 1]} : vector<8x256xf32> to vector<1x256xf32>
    %cst_131 = arith.constant 0.000000e+00 : f32
    %343 = vector.broadcast %cst_131 : f32 to vector<1x256xf32>
    %344 = arith.cmpf one, %342, %343 : vector<1x256xf32>
    %c255_i32_132 = arith.constant 255 : i32
    %345 = tpu.dynamic_rotate %309 by %c255_i32_132 dim 1 : vector<8x256xf32>, i32 -> vector<8x256xf32>
    %cst_133 = arith.constant 0.000000e+00 : f32
    %346 = vector.shape_cast %344 : vector<1x256xi1> to vector<1x256xi1>
    %347 = vector.broadcast %346 : vector<1x256xi1> to vector<8x256xi1>
    %348 = vector.broadcast %cst_133 : f32 to vector<8x256xf32>
    %349 = arith.select %347, %345, %348 : vector<8x256xi1>, vector<8x256xf32>
    %350 = vector.extract_strided_slice %0 {offsets = [5, 0], sizes = [1, 256], strides = [1, 1]} : vector<8x256xf32> to vector<1x256xf32>
    %cst_134 = arith.constant 0.000000e+00 : f32
    %351 = vector.broadcast %cst_134 : f32 to vector<1x256xf32>
    %352 = arith.cmpf one, %350, %351 : vector<1x256xf32>
    %c241_i32_135 = arith.constant 241 : i32
    %353 = tpu.dynamic_rotate %309 by %c241_i32_135 dim 1 : vector<8x256xf32>, i32 -> vector<8x256xf32>
    %cst_136 = arith.constant 0.000000e+00 : f32
    %354 = vector.shape_cast %352 : vector<1x256xi1> to vector<1x256xi1>
    %355 = vector.broadcast %354 : vector<1x256xi1> to vector<8x256xi1>
    %356 = vector.broadcast %cst_136 : f32 to vector<8x256xf32>
    %357 = arith.select %355, %353, %356 : vector<8x256xi1>, vector<8x256xf32>
    %358 = vector.extract_strided_slice %0 {offsets = [6, 0], sizes = [1, 256], strides = [1, 1]} : vector<8x256xf32> to vector<1x256xf32>
    %cst_137 = arith.constant 0.000000e+00 : f32
    %359 = vector.broadcast %cst_137 : f32 to vector<1x256xf32>
    %360 = arith.cmpf one, %358, %359 : vector<1x256xf32>
    %c240_i32_138 = arith.constant 240 : i32
    %361 = tpu.dynamic_rotate %309 by %c240_i32_138 dim 1 : vector<8x256xf32>, i32 -> vector<8x256xf32>
    %cst_139 = arith.constant 0.000000e+00 : f32
    %362 = vector.shape_cast %360 : vector<1x256xi1> to vector<1x256xi1>
    %363 = vector.broadcast %362 : vector<1x256xi1> to vector<8x256xi1>
    %364 = vector.broadcast %cst_139 : f32 to vector<8x256xf32>
    %365 = arith.select %363, %361, %364 : vector<8x256xi1>, vector<8x256xf32>
    %366 = vector.extract_strided_slice %0 {offsets = [7, 0], sizes = [1, 256], strides = [1, 1]} : vector<8x256xf32> to vector<1x256xf32>
    %cst_140 = arith.constant 0.000000e+00 : f32
    %367 = vector.broadcast %cst_140 : f32 to vector<1x256xf32>
    %368 = arith.cmpf one, %366, %367 : vector<1x256xf32>
    %c239_i32_141 = arith.constant 239 : i32
    %369 = tpu.dynamic_rotate %309 by %c239_i32_141 dim 1 : vector<8x256xf32>, i32 -> vector<8x256xf32>
    %cst_142 = arith.constant 0.000000e+00 : f32
    %370 = vector.shape_cast %368 : vector<1x256xi1> to vector<1x256xi1>
    %371 = vector.broadcast %370 : vector<1x256xi1> to vector<8x256xi1>
    %372 = vector.broadcast %cst_142 : f32 to vector<8x256xf32>
    %373 = arith.select %371, %369, %372 : vector<8x256xi1>, vector<8x256xf32>
    %374 = tpu.concatenate %317, %325, %333, %341, %309, %349, %357, %365, %373 in 0 : vector<8x256xf32>, vector<8x256xf32>, vector<8x256xf32>, vector<8x256xf32>, vector<8x256xf32>, vector<8x256xf32>, vector<8x256xf32>, vector<8x256xf32>, vector<8x256xf32> -> vector<72x256xf32>
    %cst_143 = arith.constant dense<0.000000e+00> : vector<8x256xf32>
    %375 = tpu.matmul %307, %374, %cst_143 {dimension_numbers = #tpu.dot_dimension_numbers<[1], [0], [0], [1], [0, 0, 1, 1], [], []>} : vector<8x72xf32>, vector<72x256xf32>, vector<8x256xf32> -> vector<8x256xf32>
    %376 = vector.extract_strided_slice %308 {offsets = [0, 0], sizes = [8, 1], strides = [1, 1]} : vector<8x2xf32> to vector<8x1xf32>
    %377 = vector.broadcast %376 : vector<8x1xf32> to vector<8x256xf32>
    %378 = arith.mulf %375, %377 : vector<8x256xf32>
    %379 = vector.extract_strided_slice %308 {offsets = [0, 1], sizes = [8, 1], strides = [1, 1]} : vector<8x2xf32> to vector<8x1xf32>
    %380 = vector.broadcast %379 : vector<8x1xf32> to vector<8x256xf32>
    %381 = arith.addf %378, %380 : vector<8x256xf32>
    %cst_144 = arith.constant 0.000000e+00 : f32
    %382 = vector.broadcast %cst_144 : f32 to vector<8x256xf32>
    %383 = arith.maximumf %381, %382 : vector<8x256xf32>
    %c0_145 = arith.constant 0 : index
    %c0_146 = arith.constant 0 : index
    %384 = vector.load %arg13[%c0_145, %c0_146] : memref<8x72xf32, #tpu.memory_space<vmem>>, vector<8x72xf32>
    %c0_147 = arith.constant 0 : index
    %c0_148 = arith.constant 0 : index
    %385 = vector.load %arg14[%c0_147, %c0_148] : memref<8x2xf32, #tpu.memory_space<vmem>>, vector<8x2xf32>
    %386 = arith.addf %154, %306 : vector<8x256xf32>
    %387 = vector.extract_strided_slice %0 {offsets = [0, 0], sizes = [1, 256], strides = [1, 1]} : vector<8x256xf32> to vector<1x256xf32>
    %cst_149 = arith.constant 0.000000e+00 : f32
    %388 = vector.broadcast %cst_149 : f32 to vector<1x256xf32>
    %389 = arith.cmpf one, %387, %388 : vector<1x256xf32>
    %c17_i32_150 = arith.constant 17 : i32
    %390 = tpu.dynamic_rotate %386 by %c17_i32_150 dim 1 : vector<8x256xf32>, i32 -> vector<8x256xf32>
    %cst_151 = arith.constant 0.000000e+00 : f32
    %391 = vector.shape_cast %389 : vector<1x256xi1> to vector<1x256xi1>
    %392 = vector.broadcast %391 : vector<1x256xi1> to vector<8x256xi1>
    %393 = vector.broadcast %cst_151 : f32 to vector<8x256xf32>
    %394 = arith.select %392, %390, %393 : vector<8x256xi1>, vector<8x256xf32>
    %395 = vector.extract_strided_slice %0 {offsets = [1, 0], sizes = [1, 256], strides = [1, 1]} : vector<8x256xf32> to vector<1x256xf32>
    %cst_152 = arith.constant 0.000000e+00 : f32
    %396 = vector.broadcast %cst_152 : f32 to vector<1x256xf32>
    %397 = arith.cmpf one, %395, %396 : vector<1x256xf32>
    %c16_i32_153 = arith.constant 16 : i32
    %398 = tpu.dynamic_rotate %386 by %c16_i32_153 dim 1 : vector<8x256xf32>, i32 -> vector<8x256xf32>
    %cst_154 = arith.constant 0.000000e+00 : f32
    %399 = vector.shape_cast %397 : vector<1x256xi1> to vector<1x256xi1>
    %400 = vector.broadcast %399 : vector<1x256xi1> to vector<8x256xi1>
    %401 = vector.broadcast %cst_154 : f32 to vector<8x256xf32>
    %402 = arith.select %400, %398, %401 : vector<8x256xi1>, vector<8x256xf32>
    %403 = vector.extract_strided_slice %0 {offsets = [2, 0], sizes = [1, 256], strides = [1, 1]} : vector<8x256xf32> to vector<1x256xf32>
    %cst_155 = arith.constant 0.000000e+00 : f32
    %404 = vector.broadcast %cst_155 : f32 to vector<1x256xf32>
    %405 = arith.cmpf one, %403, %404 : vector<1x256xf32>
    %c15_i32_156 = arith.constant 15 : i32
    %406 = tpu.dynamic_rotate %386 by %c15_i32_156 dim 1 : vector<8x256xf32>, i32 -> vector<8x256xf32>
    %cst_157 = arith.constant 0.000000e+00 : f32
    %407 = vector.shape_cast %405 : vector<1x256xi1> to vector<1x256xi1>
    %408 = vector.broadcast %407 : vector<1x256xi1> to vector<8x256xi1>
    %409 = vector.broadcast %cst_157 : f32 to vector<8x256xf32>
    %410 = arith.select %408, %406, %409 : vector<8x256xi1>, vector<8x256xf32>
    %411 = vector.extract_strided_slice %0 {offsets = [3, 0], sizes = [1, 256], strides = [1, 1]} : vector<8x256xf32> to vector<1x256xf32>
    %cst_158 = arith.constant 0.000000e+00 : f32
    %412 = vector.broadcast %cst_158 : f32 to vector<1x256xf32>
    %413 = arith.cmpf one, %411, %412 : vector<1x256xf32>
    %c1_i32_159 = arith.constant 1 : i32
    %414 = tpu.dynamic_rotate %386 by %c1_i32_159 dim 1 : vector<8x256xf32>, i32 -> vector<8x256xf32>
    %cst_160 = arith.constant 0.000000e+00 : f32
    %415 = vector.shape_cast %413 : vector<1x256xi1> to vector<1x256xi1>
    %416 = vector.broadcast %415 : vector<1x256xi1> to vector<8x256xi1>
    %417 = vector.broadcast %cst_160 : f32 to vector<8x256xf32>
    %418 = arith.select %416, %414, %417 : vector<8x256xi1>, vector<8x256xf32>
    %419 = vector.extract_strided_slice %0 {offsets = [4, 0], sizes = [1, 256], strides = [1, 1]} : vector<8x256xf32> to vector<1x256xf32>
    %cst_161 = arith.constant 0.000000e+00 : f32
    %420 = vector.broadcast %cst_161 : f32 to vector<1x256xf32>
    %421 = arith.cmpf one, %419, %420 : vector<1x256xf32>
    %c255_i32_162 = arith.constant 255 : i32
    %422 = tpu.dynamic_rotate %386 by %c255_i32_162 dim 1 : vector<8x256xf32>, i32 -> vector<8x256xf32>
    %cst_163 = arith.constant 0.000000e+00 : f32
    %423 = vector.shape_cast %421 : vector<1x256xi1> to vector<1x256xi1>
    %424 = vector.broadcast %423 : vector<1x256xi1> to vector<8x256xi1>
    %425 = vector.broadcast %cst_163 : f32 to vector<8x256xf32>
    %426 = arith.select %424, %422, %425 : vector<8x256xi1>, vector<8x256xf32>
    %427 = vector.extract_strided_slice %0 {offsets = [5, 0], sizes = [1, 256], strides = [1, 1]} : vector<8x256xf32> to vector<1x256xf32>
    %cst_164 = arith.constant 0.000000e+00 : f32
    %428 = vector.broadcast %cst_164 : f32 to vector<1x256xf32>
    %429 = arith.cmpf one, %427, %428 : vector<1x256xf32>
    %c241_i32_165 = arith.constant 241 : i32
    %430 = tpu.dynamic_rotate %386 by %c241_i32_165 dim 1 : vector<8x256xf32>, i32 -> vector<8x256xf32>
    %cst_166 = arith.constant 0.000000e+00 : f32
    %431 = vector.shape_cast %429 : vector<1x256xi1> to vector<1x256xi1>
    %432 = vector.broadcast %431 : vector<1x256xi1> to vector<8x256xi1>
    %433 = vector.broadcast %cst_166 : f32 to vector<8x256xf32>
    %434 = arith.select %432, %430, %433 : vector<8x256xi1>, vector<8x256xf32>
    %435 = vector.extract_strided_slice %0 {offsets = [6, 0], sizes = [1, 256], strides = [1, 1]} : vector<8x256xf32> to vector<1x256xf32>
    %cst_167 = arith.constant 0.000000e+00 : f32
    %436 = vector.broadcast %cst_167 : f32 to vector<1x256xf32>
    %437 = arith.cmpf one, %435, %436 : vector<1x256xf32>
    %c240_i32_168 = arith.constant 240 : i32
    %438 = tpu.dynamic_rotate %386 by %c240_i32_168 dim 1 : vector<8x256xf32>, i32 -> vector<8x256xf32>
    %cst_169 = arith.constant 0.000000e+00 : f32
    %439 = vector.shape_cast %437 : vector<1x256xi1> to vector<1x256xi1>
    %440 = vector.broadcast %439 : vector<1x256xi1> to vector<8x256xi1>
    %441 = vector.broadcast %cst_169 : f32 to vector<8x256xf32>
    %442 = arith.select %440, %438, %441 : vector<8x256xi1>, vector<8x256xf32>
    %443 = vector.extract_strided_slice %0 {offsets = [7, 0], sizes = [1, 256], strides = [1, 1]} : vector<8x256xf32> to vector<1x256xf32>
    %cst_170 = arith.constant 0.000000e+00 : f32
    %444 = vector.broadcast %cst_170 : f32 to vector<1x256xf32>
    %445 = arith.cmpf one, %443, %444 : vector<1x256xf32>
    %c239_i32_171 = arith.constant 239 : i32
    %446 = tpu.dynamic_rotate %386 by %c239_i32_171 dim 1 : vector<8x256xf32>, i32 -> vector<8x256xf32>
    %cst_172 = arith.constant 0.000000e+00 : f32
    %447 = vector.shape_cast %445 : vector<1x256xi1> to vector<1x256xi1>
    %448 = vector.broadcast %447 : vector<1x256xi1> to vector<8x256xi1>
    %449 = vector.broadcast %cst_172 : f32 to vector<8x256xf32>
    %450 = arith.select %448, %446, %449 : vector<8x256xi1>, vector<8x256xf32>
    %451 = tpu.concatenate %394, %402, %410, %418, %386, %426, %434, %442, %450 in 0 : vector<8x256xf32>, vector<8x256xf32>, vector<8x256xf32>, vector<8x256xf32>, vector<8x256xf32>, vector<8x256xf32>, vector<8x256xf32>, vector<8x256xf32>, vector<8x256xf32> -> vector<72x256xf32>
    %cst_173 = arith.constant dense<0.000000e+00> : vector<8x256xf32>
    %452 = tpu.matmul %384, %451, %cst_173 {dimension_numbers = #tpu.dot_dimension_numbers<[1], [0], [0], [1], [0, 0, 1, 1], [], []>} : vector<8x72xf32>, vector<72x256xf32>, vector<8x256xf32> -> vector<8x256xf32>
    %453 = vector.extract_strided_slice %385 {offsets = [0, 0], sizes = [8, 1], strides = [1, 1]} : vector<8x2xf32> to vector<8x1xf32>
    %454 = vector.broadcast %453 : vector<8x1xf32> to vector<8x256xf32>
    %455 = arith.mulf %452, %454 : vector<8x256xf32>
    %456 = vector.extract_strided_slice %385 {offsets = [0, 1], sizes = [8, 1], strides = [1, 1]} : vector<8x2xf32> to vector<8x1xf32>
    %457 = vector.broadcast %456 : vector<8x1xf32> to vector<8x256xf32>
    %458 = arith.addf %455, %457 : vector<8x256xf32>
    %cst_174 = arith.constant 0.000000e+00 : f32
    %459 = vector.broadcast %cst_174 : f32 to vector<8x256xf32>
    %460 = arith.maximumf %458, %459 : vector<8x256xf32>
    %c0_175 = arith.constant 0 : index
    %c0_176 = arith.constant 0 : index
    %461 = vector.load %arg15[%c0_175, %c0_176] : memref<8x72xf32, #tpu.memory_space<vmem>>, vector<8x72xf32>
    %c0_177 = arith.constant 0 : index
    %c0_178 = arith.constant 0 : index
    %462 = vector.load %arg16[%c0_177, %c0_178] : memref<8x2xf32, #tpu.memory_space<vmem>>, vector<8x2xf32>
    %463 = vector.extract_strided_slice %0 {offsets = [0, 0], sizes = [1, 256], strides = [1, 1]} : vector<8x256xf32> to vector<1x256xf32>
    %cst_179 = arith.constant 0.000000e+00 : f32
    %464 = vector.broadcast %cst_179 : f32 to vector<1x256xf32>
    %465 = arith.cmpf one, %463, %464 : vector<1x256xf32>
    %c17_i32_180 = arith.constant 17 : i32
    %466 = tpu.dynamic_rotate %460 by %c17_i32_180 dim 1 : vector<8x256xf32>, i32 -> vector<8x256xf32>
    %cst_181 = arith.constant 0.000000e+00 : f32
    %467 = vector.shape_cast %465 : vector<1x256xi1> to vector<1x256xi1>
    %468 = vector.broadcast %467 : vector<1x256xi1> to vector<8x256xi1>
    %469 = vector.broadcast %cst_181 : f32 to vector<8x256xf32>
    %470 = arith.select %468, %466, %469 : vector<8x256xi1>, vector<8x256xf32>
    %471 = vector.extract_strided_slice %0 {offsets = [1, 0], sizes = [1, 256], strides = [1, 1]} : vector<8x256xf32> to vector<1x256xf32>
    %cst_182 = arith.constant 0.000000e+00 : f32
    %472 = vector.broadcast %cst_182 : f32 to vector<1x256xf32>
    %473 = arith.cmpf one, %471, %472 : vector<1x256xf32>
    %c16_i32_183 = arith.constant 16 : i32
    %474 = tpu.dynamic_rotate %460 by %c16_i32_183 dim 1 : vector<8x256xf32>, i32 -> vector<8x256xf32>
    %cst_184 = arith.constant 0.000000e+00 : f32
    %475 = vector.shape_cast %473 : vector<1x256xi1> to vector<1x256xi1>
    %476 = vector.broadcast %475 : vector<1x256xi1> to vector<8x256xi1>
    %477 = vector.broadcast %cst_184 : f32 to vector<8x256xf32>
    %478 = arith.select %476, %474, %477 : vector<8x256xi1>, vector<8x256xf32>
    %479 = vector.extract_strided_slice %0 {offsets = [2, 0], sizes = [1, 256], strides = [1, 1]} : vector<8x256xf32> to vector<1x256xf32>
    %cst_185 = arith.constant 0.000000e+00 : f32
    %480 = vector.broadcast %cst_185 : f32 to vector<1x256xf32>
    %481 = arith.cmpf one, %479, %480 : vector<1x256xf32>
    %c15_i32_186 = arith.constant 15 : i32
    %482 = tpu.dynamic_rotate %460 by %c15_i32_186 dim 1 : vector<8x256xf32>, i32 -> vector<8x256xf32>
    %cst_187 = arith.constant 0.000000e+00 : f32
    %483 = vector.shape_cast %481 : vector<1x256xi1> to vector<1x256xi1>
    %484 = vector.broadcast %483 : vector<1x256xi1> to vector<8x256xi1>
    %485 = vector.broadcast %cst_187 : f32 to vector<8x256xf32>
    %486 = arith.select %484, %482, %485 : vector<8x256xi1>, vector<8x256xf32>
    %487 = vector.extract_strided_slice %0 {offsets = [3, 0], sizes = [1, 256], strides = [1, 1]} : vector<8x256xf32> to vector<1x256xf32>
    %cst_188 = arith.constant 0.000000e+00 : f32
    %488 = vector.broadcast %cst_188 : f32 to vector<1x256xf32>
    %489 = arith.cmpf one, %487, %488 : vector<1x256xf32>
    %c1_i32_189 = arith.constant 1 : i32
    %490 = tpu.dynamic_rotate %460 by %c1_i32_189 dim 1 : vector<8x256xf32>, i32 -> vector<8x256xf32>
    %cst_190 = arith.constant 0.000000e+00 : f32
    %491 = vector.shape_cast %489 : vector<1x256xi1> to vector<1x256xi1>
    %492 = vector.broadcast %491 : vector<1x256xi1> to vector<8x256xi1>
    %493 = vector.broadcast %cst_190 : f32 to vector<8x256xf32>
    %494 = arith.select %492, %490, %493 : vector<8x256xi1>, vector<8x256xf32>
    %495 = vector.extract_strided_slice %0 {offsets = [4, 0], sizes = [1, 256], strides = [1, 1]} : vector<8x256xf32> to vector<1x256xf32>
    %cst_191 = arith.constant 0.000000e+00 : f32
    %496 = vector.broadcast %cst_191 : f32 to vector<1x256xf32>
    %497 = arith.cmpf one, %495, %496 : vector<1x256xf32>
    %c255_i32_192 = arith.constant 255 : i32
    %498 = tpu.dynamic_rotate %460 by %c255_i32_192 dim 1 : vector<8x256xf32>, i32 -> vector<8x256xf32>
    %cst_193 = arith.constant 0.000000e+00 : f32
    %499 = vector.shape_cast %497 : vector<1x256xi1> to vector<1x256xi1>
    %500 = vector.broadcast %499 : vector<1x256xi1> to vector<8x256xi1>
    %501 = vector.broadcast %cst_193 : f32 to vector<8x256xf32>
    %502 = arith.select %500, %498, %501 : vector<8x256xi1>, vector<8x256xf32>
    %503 = vector.extract_strided_slice %0 {offsets = [5, 0], sizes = [1, 256], strides = [1, 1]} : vector<8x256xf32> to vector<1x256xf32>
    %cst_194 = arith.constant 0.000000e+00 : f32
    %504 = vector.broadcast %cst_194 : f32 to vector<1x256xf32>
    %505 = arith.cmpf one, %503, %504 : vector<1x256xf32>
    %c241_i32_195 = arith.constant 241 : i32
    %506 = tpu.dynamic_rotate %460 by %c241_i32_195 dim 1 : vector<8x256xf32>, i32 -> vector<8x256xf32>
    %cst_196 = arith.constant 0.000000e+00 : f32
    %507 = vector.shape_cast %505 : vector<1x256xi1> to vector<1x256xi1>
    %508 = vector.broadcast %507 : vector<1x256xi1> to vector<8x256xi1>
    %509 = vector.broadcast %cst_196 : f32 to vector<8x256xf32>
    %510 = arith.select %508, %506, %509 : vector<8x256xi1>, vector<8x256xf32>
    %511 = vector.extract_strided_slice %0 {offsets = [6, 0], sizes = [1, 256], strides = [1, 1]} : vector<8x256xf32> to vector<1x256xf32>
    %cst_197 = arith.constant 0.000000e+00 : f32
    %512 = vector.broadcast %cst_197 : f32 to vector<1x256xf32>
    %513 = arith.cmpf one, %511, %512 : vector<1x256xf32>
    %c240_i32_198 = arith.constant 240 : i32
    %514 = tpu.dynamic_rotate %460 by %c240_i32_198 dim 1 : vector<8x256xf32>, i32 -> vector<8x256xf32>
    %cst_199 = arith.constant 0.000000e+00 : f32
    %515 = vector.shape_cast %513 : vector<1x256xi1> to vector<1x256xi1>
    %516 = vector.broadcast %515 : vector<1x256xi1> to vector<8x256xi1>
    %517 = vector.broadcast %cst_199 : f32 to vector<8x256xf32>
    %518 = arith.select %516, %514, %517 : vector<8x256xi1>, vector<8x256xf32>
    %519 = vector.extract_strided_slice %0 {offsets = [7, 0], sizes = [1, 256], strides = [1, 1]} : vector<8x256xf32> to vector<1x256xf32>
    %cst_200 = arith.constant 0.000000e+00 : f32
    %520 = vector.broadcast %cst_200 : f32 to vector<1x256xf32>
    %521 = arith.cmpf one, %519, %520 : vector<1x256xf32>
    %c239_i32_201 = arith.constant 239 : i32
    %522 = tpu.dynamic_rotate %460 by %c239_i32_201 dim 1 : vector<8x256xf32>, i32 -> vector<8x256xf32>
    %cst_202 = arith.constant 0.000000e+00 : f32
    %523 = vector.shape_cast %521 : vector<1x256xi1> to vector<1x256xi1>
    %524 = vector.broadcast %523 : vector<1x256xi1> to vector<8x256xi1>
    %525 = vector.broadcast %cst_202 : f32 to vector<8x256xf32>
    %526 = arith.select %524, %522, %525 : vector<8x256xi1>, vector<8x256xf32>
    %527 = tpu.concatenate %470, %478, %486, %494, %460, %502, %510, %518, %526 in 0 : vector<8x256xf32>, vector<8x256xf32>, vector<8x256xf32>, vector<8x256xf32>, vector<8x256xf32>, vector<8x256xf32>, vector<8x256xf32>, vector<8x256xf32>, vector<8x256xf32> -> vector<72x256xf32>
    %cst_203 = arith.constant dense<0.000000e+00> : vector<8x256xf32>
    %528 = tpu.matmul %461, %527, %cst_203 {dimension_numbers = #tpu.dot_dimension_numbers<[1], [0], [0], [1], [0, 0, 1, 1], [], []>} : vector<8x72xf32>, vector<72x256xf32>, vector<8x256xf32> -> vector<8x256xf32>
    %529 = vector.extract_strided_slice %462 {offsets = [0, 0], sizes = [8, 1], strides = [1, 1]} : vector<8x2xf32> to vector<8x1xf32>
    %530 = vector.broadcast %529 : vector<8x1xf32> to vector<8x256xf32>
    %531 = arith.mulf %528, %530 : vector<8x256xf32>
    %532 = vector.extract_strided_slice %462 {offsets = [0, 1], sizes = [8, 1], strides = [1, 1]} : vector<8x2xf32> to vector<8x1xf32>
    %533 = vector.broadcast %532 : vector<8x1xf32> to vector<8x256xf32>
    %534 = arith.addf %531, %533 : vector<8x256xf32>
    %cst_204 = arith.constant 0.000000e+00 : f32
    %535 = vector.broadcast %cst_204 : f32 to vector<8x256xf32>
    %536 = arith.maximumf %534, %535 : vector<8x256xf32>
    %c0_205 = arith.constant 0 : index
    %c0_206 = arith.constant 0 : index
    %c0_207 = arith.constant 0 : index
    %537 = vector.load %arg17[%c0_205, %c0_206, %c0_207] : memref<1x8x256xf32, #tpu.memory_space<vmem>>, vector<1x8x256xf32>
    %538 = vector.shape_cast %537 : vector<1x8x256xf32> to vector<8x256xf32>
    %539 = vector.shape_cast %78 : vector<8x256xf32> to vector<1x8x256xf32>
    tpu.vector_store %arg17[%c0_205, %c0_206, %c0_207], %539 {strides = array<i32>} : memref<1x8x256xf32, #tpu.memory_space<vmem>>, vector<1x8x256xf32>,
    %c0_208 = arith.constant 0 : index
    %c0_209 = arith.constant 0 : index
    %c0_210 = arith.constant 0 : index
    %540 = vector.load %arg18[%c0_208, %c0_209, %c0_210] : memref<1x8x256xf32, #tpu.memory_space<vmem>>, vector<1x8x256xf32>
    %541 = vector.shape_cast %540 : vector<1x8x256xf32> to vector<8x256xf32>
    %542 = vector.shape_cast %383 : vector<8x256xf32> to vector<1x8x256xf32>
    tpu.vector_store %arg18[%c0_208, %c0_209, %c0_210], %542 {strides = array<i32>} : memref<1x8x256xf32, #tpu.memory_space<vmem>>, vector<1x8x256xf32>,
    %c0_211 = arith.constant 0 : index
    %c0_212 = arith.constant 0 : index
    %c0_213 = arith.constant 0 : index
    %543 = vector.load %arg19[%c0_211, %c0_212, %c0_213] : memref<1x8x256xf32, #tpu.memory_space<vmem>>, vector<1x8x256xf32>
    %544 = vector.shape_cast %543 : vector<1x8x256xf32> to vector<8x256xf32>
    %545 = vector.shape_cast %536 : vector<8x256xf32> to vector<1x8x256xf32>
    tpu.vector_store %arg19[%c0_211, %c0_212, %c0_213], %545 {strides = array<i32>} : memref<1x8x256xf32, #tpu.memory_space<vmem>>, vector<1x8x256xf32>,
    return
  }
  func.func @transform_0(%arg0: i32) -> (i32, i32, i32) {
    %c0_i32 = arith.constant 0 : i32
    %c0_i32_0 = arith.constant 0 : i32
    %c0_i32_1 = arith.constant 0 : i32
    return %arg0, %c0_i32, %c0_i32_0 : i32, i32, i32
  }
  func.func @transform_1(%arg0: i32) -> (i32, i32) {
    %c0_i32 = arith.constant 0 : i32
    %c0_i32_0 = arith.constant 0 : i32
    %c0_i32_1 = arith.constant 0 : i32
    return %c0_i32, %c0_i32_0 : i32, i32
  }
  func.func @transform_2(%arg0: i32) -> (i32, i32) {
    %c0_i32 = arith.constant 0 : i32
    %c0_i32_0 = arith.constant 0 : i32
    %c0_i32_1 = arith.constant 0 : i32
    return %c0_i32, %c0_i32_0 : i32, i32
  }
  func.func @transform_3(%arg0: i32) -> (i32, i32) {
    %c0_i32 = arith.constant 0 : i32
    %c0_i32_0 = arith.constant 0 : i32
    %c0_i32_1 = arith.constant 0 : i32
    return %c0_i32, %c0_i32_0 : i32, i32
  }
  func.func @transform_4(%arg0: i32) -> (i32, i32) {
    %c0_i32 = arith.constant 0 : i32
    %c0_i32_0 = arith.constant 0 : i32
    %c0_i32_1 = arith.constant 0 : i32
    return %c0_i32, %c0_i32_0 : i32, i32
  }
  func.func @transform_5(%arg0: i32) -> (i32, i32) {
    %c0_i32 = arith.constant 0 : i32
    %c0_i32_0 = arith.constant 0 : i32
    %c0_i32_1 = arith.constant 0 : i32
    return %c0_i32, %c0_i32_0 : i32, i32
  }
  func.func @transform_6(%arg0: i32) -> (i32, i32) {
    %c0_i32 = arith.constant 0 : i32
    %c0_i32_0 = arith.constant 0 : i32
    %c0_i32_1 = arith.constant 0 : i32
    return %c0_i32, %c0_i32_0 : i32, i32
  }
  func.func @transform_7(%arg0: i32) -> (i32, i32) {
    %c0_i32 = arith.constant 0 : i32
    %c0_i32_0 = arith.constant 0 : i32
    %c0_i32_1 = arith.constant 0 : i32
    return %c0_i32, %c0_i32_0 : i32, i32
  }
  func.func @transform_8(%arg0: i32) -> (i32, i32) {
    %c0_i32 = arith.constant 0 : i32
    %c0_i32_0 = arith.constant 0 : i32
    %c0_i32_1 = arith.constant 0 : i32
    return %c0_i32, %c0_i32_0 : i32, i32
  }
  func.func @transform_9(%arg0: i32) -> (i32, i32) {
    %c0_i32 = arith.constant 0 : i32
    %c0_i32_0 = arith.constant 0 : i32
    %c0_i32_1 = arith.constant 0 : i32
    return %c0_i32, %c0_i32_0 : i32, i32
  }
  func.func @transform_10(%arg0: i32) -> (i32, i32) {
    %c0_i32 = arith.constant 0 : i32
    %c0_i32_0 = arith.constant 0 : i32
    %c0_i32_1 = arith.constant 0 : i32
    return %c0_i32, %c0_i32_0 : i32, i32
  }
  func.func @transform_11(%arg0: i32) -> (i32, i32) {
    %c0_i32 = arith.constant 0 : i32
    %c0_i32_0 = arith.constant 0 : i32
    %c0_i32_1 = arith.constant 0 : i32
    return %c0_i32, %c0_i32_0 : i32, i32
  }
  func.func @transform_12(%arg0: i32) -> (i32, i32) {
    %c0_i32 = arith.constant 0 : i32
    %c0_i32_0 = arith.constant 0 : i32
    %c0_i32_1 = arith.constant 0 : i32
    return %c0_i32, %c0_i32_0 : i32, i32
  }
  func.func @transform_13(%arg0: i32) -> (i32, i32) {
    %c0_i32 = arith.constant 0 : i32
    %c0_i32_0 = arith.constant 0 : i32
    %c0_i32_1 = arith.constant 0 : i32
    return %c0_i32, %c0_i32_0 : i32, i32
  }
  func.func @transform_14(%arg0: i32) -> (i32, i32) {
    %c0_i32 = arith.constant 0 : i32
    %c0_i32_0 = arith.constant 0 : i32
    %c0_i32_1 = arith.constant 0 : i32
    return %c0_i32, %c0_i32_0 : i32, i32
  }
  func.func @transform_15(%arg0: i32) -> (i32, i32) {
    %c0_i32 = arith.constant 0 : i32
    %c0_i32_0 = arith.constant 0 : i32
    %c0_i32_1 = arith.constant 0 : i32
    return %c0_i32, %c0_i32_0 : i32, i32
  }
  func.func @transform_16(%arg0: i32) -> (i32, i32, i32) {
    %c0_i32 = arith.constant 0 : i32
    %c0_i32_0 = arith.constant 0 : i32
    %c0_i32_1 = arith.constant 0 : i32
    return %arg0, %c0_i32, %c0_i32_0 : i32, i32, i32
  }
  func.func @transform_17(%arg0: i32) -> (i32, i32, i32) {
    %c0_i32 = arith.constant 0 : i32
    %c0_i32_0 = arith.constant 0 : i32
    %c0_i32_1 = arith.constant 0 : i32
    return %arg0, %c0_i32, %c0_i32_0 : i32, i32, i32
  }
  func.func @transform_18(%arg0: i32) -> (i32, i32, i32) {
    %c0_i32 = arith.constant 0 : i32
    %c0_i32_0 = arith.constant 0 : i32
    %c0_i32_1 = arith.constant 0 : i32
    return %arg0, %c0_i32, %c0_i32_0 : i32, i32, i32
  }
}

</mosaic_0001>

<bundles_post_ra>
// kernel: fractal_block_nchw.1
= control target key start
LH: loop header
LB: loop body
LE: loop exit
PB: predicated region body
PF: predicated region fallthrough
CT: control target
= control target key end

     0   :  { %s2312_s27 = smov 0   ;;  %s2867_s0 = inlined_call_operand.vmem [shape: f32[2,8,256], index: 0, kind: input, shape index: {}]   ;;  %s2868_s1 = inlined_call_operand.vmem [shape: f32[8,256], index: 1, kind: input, shape index: {}]   ;;  %s2869_s2 = inlined_call_operand.vmem [shape: f32[8,72], index: 2, kind: input, shape index: {}]   ;;  %s2870_s3 = inlined_call_operand.vmem [shape: f32[8,2], index: 3, kind: input, shape index: {}]   ;;  %s2871_s4 = inlined_call_operand.vmem [shape: f32[8,72], index: 4, kind: input, shape index: {}]   ;;  %s2872_s5 = inlined_call_operand.vmem [shape: f32[8,2], index: 5, kind: input, shape index: {}]   ;;  %s2873_s6 = inlined_call_operand.vmem [shape: f32[8,72], index: 6, kind: input, shape index: {}]   ;;  %s2874_s7 = inlined_call_operand.vmem [shape: f32[8,2], index: 7, kind: input, shape index: {}]   ;;  %s2875_s8 = inlined_call_operand.vmem [shape: f32[8,72], index: 8, kind: input, shape index: {}]   ;;  %s2876_s9 = inlined_call_operand.vmem [shape: f32[8,2], index: 9, kind: input, shape index: {}]   ;;  %s2877_s10 = inlined_call_operand.vmem [shape: f32[8,72], index: 10, kind: input, shape index: {}]   ;;  %s2878_s11 = inlined_call_operand.vmem [shape: f32[8,2], index: 11, kind: input, shape index: {}]   ;;  %s2879_s12 = inlined_call_operand.vmem [shape: f32[8,72], index: 12, kind: input, shape index: {}]   ;;  %s2880_s13 = inlined_call_operand.vmem [shape: f32[8,2], index: 13, kind: input, shape index: {}]   ;;  %s2881_s14 = inlined_call_operand.vmem [shape: f32[8,72], index: 14, kind: input, shape index: {}]   ;;  %s2882_s15 = inlined_call_operand.vmem [shape: f32[8,2], index: 15, kind: input, shape index: {}]   ;;  %s2883_s16 = inlined_call_operand.vmem [shape: f32[2,8,256], index: 16, kind: output, shape index: {0}]   ;;  %s2884_s17 = inlined_call_operand.vmem [shape: f32[2,8,256], index: 17, kind: output, shape index: {1}]   ;;  %s2885_s18 = inlined_call_operand.vmem [shape: f32[2,8,256], index: 18, kind: output, shape index: {2}]  }
   0x1   :  { %2899 = sst [smem:[#allocation2_spill]] %s2867_s0 }
   0x2   :  { %2900 = sst [smem:[#allocation3_spill]] %s2868_s1 }
   0x3   :  { %2901 = sst [smem:[#allocation4_spill]] %s2869_s2 }
   0x4 LB: > { %s1722_s28 = sadd.s32 4294967295, %s2203_s27   ;;  %p1726_p0 = scmp.ge.s32.totalorder %s2203_s27, 1  ;;  %s2203_s27 = sphi %s2312_s27, %s29_s27  }
   0x5   : > { %p517_p1 = scmp.lt.s32.totalorder %s2203_s27, 3 }
   0x7   : > { %p518_p2 = pnand %p1726_p0, %p517_p1 }
   0x8   : > { %p581_p3 = scmp.lt.s32.totalorder (!%p518_p2), %s1722_s28, 1  ;;  %v2205_v0 = vmov (!%p518_p2), 0   ;;  %s2902_s19 = sld [smem:[#allocation2_spill]] (!%p518_p2)  ;;  %v2214_v4 = vmov (!%p518_p2), 0.0   ;;  %v947_v5 = vld [vmem:[%s2874_s7] sm:$0xff] (!%p518_p2)  ;;  %v2215_v6 = vmov (!%p518_p2), 1   ;;  %v613_v7 = vlaneseq (!%p518_p2) }
   0x9   : > { %521 = sbr.rel (%p518_p2) target bundleno = 1490 (0x5d2), region = 84  ;;  %2083 = vset.pattern.permute.xlu1 (!%p518_p2), %v2205_v0  ;;  %s2206_s20 = smov (!%p518_p2), 15   ;;  %833 = vmatprep.mubr.f32.mxu0 (!%p518_p2), %v2214_v4 }
   0xa   : > { %s2207_s21 = smov (!%p518_p2), 17   ;;  %s2889_s22 = smov (!%p518_p2), 1   ;;  %924 = vmatprep.mubr.f32.mxu1 (!%p518_p2), %v2214_v4  ;;  %2084 = vset.pattern.permute.xlu0 (!%p518_p2), %v2215_v6  ;;  %v2357_v10 = vshrl.u32 (!%p518_p2), %v613_v7, 7  ;;  %v2369_v17 = vand.u32 (!%p518_p2), 127, %v613_v7 }
   0xb   : > { %s2209_s2 = smov (!%p518_p2), 16   ;;  %s2210_s23 = smov (!%p518_p2), 127  }
   0xc   : > { %s2887_s24 = smov (!%p518_p2), 113   ;;  %s2212_s25 = smov (!%p518_p2), 112   ;;  %v622_v11 = vsub.s32 (!%p518_p2), 0, %v2357_v10  ;;  %v641_v12 = vsub.s32 (!%p518_p2), 1, %v2357_v10  ;;  %v660_v15 = vsub.s32 (!%p518_p2), 2, %v2357_v10  ;;  %v679_v16 = vsub.s32 (!%p518_p2), 3, %v2357_v10 }
   0xd   : > { %s2213_s26 = smov (!%p518_p2), 111   ;;  %vm2894_vm2 = vcmp.lt.s32.totalorder (!%p518_p2), %v2369_v17, 15  ;;  %vm2891_vm3 = vcmp.lt.s32.totalorder (!%p518_p2), %v2369_v17, 1  ;;  %vm2896_vm4 = vcmp.lt.s32.totalorder (!%p518_p2), %v2369_v17, 17  ;;  %vm2897_vm5 = vcmp.lt.s32.totalorder (!%p518_p2), %v2369_v17, 16 }
   0xe   : > { %vm2892_vm6 = vcmp.lt.s32.totalorder (!%p518_p2), %v2369_v17, 127  ;;  %v698_v28 = vsub.s32 (!%p518_p2), 4, %v2357_v10  ;;  %vm2893_vm10 = vcmp.lt.s32.totalorder (!%p518_p2), %v2369_v17, 113  ;;  %v717_v35 = vsub.s32 (!%p518_p2), 5, %v2357_v10 }
   0xf   : > { %v736_v36 = vsub.s32 (!%p518_p2), 6, %v2357_v10 }
  0x10   : > { %s2966_s28 = smov (!%p581_p3, %s1722_s28), 1 }
  0x11   : > { %s2321_s29 = sshll.u32 %s2966_s28, 4  ;;  %s2920_s28 = sld [smem:[#allocation4_spill]] }
  0x12   : > { %s585_s1 = scalar_lea.vmem %s2902_s19, %s2321_s29  ;;  %s590_s19 = scalar_lea.vmem %s2883_s16, %s2321_s29 }
  0x13   : > { %v2327_v1 = vld [vmem:[%s585_s1] sm:$0xff]  ;;  %v2329_v2 = vld [vmem:[%s585_s1 + $0x8] sm:$0xff]  ;;  %s2903_s1 = sld [smem:[#allocation3_spill]] }
  0x14   : > { %v2058_v3 = vpack.i.bf16 %v2329_v2, %v2327_v1 }
  0x16   : > { %2059 = vrot.lane.b32.xlu1 %v2058_v3, %s2206_s20  ;;  %2049 = vrot.lane.b32.xlu0 %v2058_v3, %s2207_s21 }
  0x19   : > { %v602_v8 = vld [vmem:[%s2903_s1 + $0x8] sm:$0xff]  ;;  %v601_v9 = vld [vmem:[%s2903_s1] sm:$0xff] }
  0x1a   : > { %2064 = vrot.lane.b32.xlu1 %v2058_v3, %s2889_s22  ;;  %2054 = vrot.lane.b32.xlu0 %v2058_v3, %s2209_s2  ;;  %vm608_vm0 = vcmp.ne.f32.partialorder %v602_v8, 0.0  ;;  %vm607_vm1 = vcmp.ne.f32.partialorder %v601_v9, 0.0 }
  0x1b   : > { %v2362_v13 = vsel %vm608_vm0, 1, %v2205_v0  ;;  %v2365_v14 = vsel %vm607_vm1, 1, %v2205_v0 }
  0x1c   : > { %v627_v18 = vrot.slane %v2362_v13, %v622_v11  ;;  %v646_v19 = vrot.slane %v2362_v13, %v641_v12  ;;  %v623_v20 = vrot.slane %v2365_v14, %v622_v11  ;;  %v642_v21 = vrot.slane %v2365_v14, %v641_v12 }
  0x1d   : > { %v665_v22 = vrot.slane %v2362_v13, %v660_v15  ;;  %v684_v23 = vrot.slane %v2362_v13, %v679_v16  ;;  %v2380_v24 = vrot.slane %v2365_v14, %v660_v15  ;;  %v680_v27 = vrot.slane %v2365_v14, %v679_v16 }
  0x1e   : > { %2069 = vrot.lane.b32.xlu0 %v2058_v3, %s2210_s23  ;;  %2074 = vrot.lane.b32.xlu1 %v2058_v3, %s2887_s24  ;;  %vm629_vm7 = vcmp.eq.s32.totalorder %v627_v18, 1  ;;  %vm648_vm8 = vcmp.eq.s32.totalorder %v646_v19, 1  ;;  %vm628_vm9 = vcmp.eq.s32.totalorder %v623_v20, 1  ;;  %vm647_vm11 = vcmp.eq.s32.totalorder %v642_v21, 1  ;;  %s2921_s24 = smov 1  }
  0x1f   : > { %vm667_vm12 = vcmp.eq.s32.totalorder %v665_v22, 1  ;;  %vm686_vm13 = vcmp.eq.s32.totalorder %v684_v23, 1  ;;  %vm666_vm14 = vcmp.eq.s32.totalorder %v2380_v24, 1  ;;  %vm685_vm15 = vcmp.eq.s32.totalorder %v680_v27, 1  ;;  %vm2403_vm0 = vmpackc.low %vm648_vm8, %vm629_vm7 }
  0x20   : > { %v703_v43 = vrot.slane %v2362_v13, %v698_v28  ;;  %v699_v44 = vrot.slane %v2365_v14, %v698_v28  ;;  %vm2417_vm1 = vmpackc.low %vm647_vm11, %vm628_vm9  ;;  %v722_v55 = vrot.slane %v2362_v13, %v717_v35  ;;  %v741_v56 = vrot.slane %v2362_v13, %v736_v36 }
  0x21   : > { %vm2425_vm7 = vmpackc.low %vm686_vm13, %vm667_vm12  ;;  %vm2895_vm9 = vcmp.lt.s32.totalorder %v2369_v17, 112  ;;  %v718_v7 = vrot.slane %v2365_v14, %v717_v35  ;;  %v737_v8 = vrot.slane %v2365_v14, %v736_v36  ;;  %v755_v16 = vsub.s32 7, %v2357_v10  ;;  %v946_v35 = vld [vmem:[%s2873_s6] sm:$0xff] }
  0x22   : > { %2079 = vrot.lane.b32.xlu0 %v2058_v3, %s2212_s25  ;;  %746 = vrot.lane.b32.xlu1 %v2327_v1, %s2213_s26  ;;  %vm705_vm8 = vcmp.eq.s32.totalorder %v703_v43, 1  ;;  %vm2464_vm11 = vmpackc.low %vm685_vm15, %vm666_vm14  ;;  %vm704_vm12 = vcmp.eq.s32.totalorder %v699_v44, 1  ;;  %vm2216_vm13 = vmmov 1   ;;  %vm724_vm14 = vcmp.eq.s32.totalorder %v722_v55, 1 }
  0x23   : > { %vm743_vm15 = vcmp.eq.s32.totalorder %v741_v56, 1  ;;  %v2501_v27 = vrot.slane %v2362_v13, %v755_v16 }
  0x26   : > { %748 = vrot.lane.b32.xlu0 %v2329_v2, %s2213_s26  ;;  %1024 = vperm.xlu1 %2083, %v947_v5  }
  0x2a   : > { %1030 = vperm.xlu0 %2084, %v947_v5  }
  0x2e   : > { %2120 = vset.pattern.permute.xlu0 %v2205_v0 }
  0x88   : > { %v2060_v25 = vpop.permute.xlu1 %2059  ;;  %v2050_v26 = vpop.permute.xlu0 %2049 }
  0x89   : > { %v2062_v29 = vunpack.i.h.bf16 %v2060_v25  ;;  %v2061_v30 = vunpack.i.l.bf16 %v2060_v25  ;;  %v2052_v31 = vunpack.i.h.bf16 %v2050_v26  ;;  %v2051_v32 = vunpack.i.l.bf16 %v2050_v26 }
  0x8b   : > { %v656_v41 = vsel %vm2894_vm2, %v2061_v30, %v2062_v29  ;;  %v616_v42 = vsel %vm2896_vm4, %v2051_v32, %v2052_v31  ;;  %v617_v48 = vsel %vm2896_vm4, %v2052_v31, %v2051_v32  ;;  %v657_v62 = vsel %vm2894_vm2, %v2062_v29, %v2061_v30 }
  0x8c   : > { %v2065_v33 = vpop.permute.xlu1 %2064  ;;  %v2055_v34 = vpop.permute.xlu0 %2054  ;;  %vm742_vm2 = vcmp.eq.s32.totalorder %v737_v8, 1  ;;  %v2517_v31 = vrot.slane %v2365_v14, %v755_v16  ;;  %v605_v14 = vld [vmem:[%s2920_s28] sm:$0xff]  ;;  %s2922_s28 = smov 113  }
  0x8d   : > { %v2067_v37 = vunpack.i.h.bf16 %v2065_v33  ;;  %v2066_v38 = vunpack.i.l.bf16 %v2065_v33  ;;  %v2057_v39 = vunpack.i.h.bf16 %v2055_v34  ;;  %v2056_v40 = vunpack.i.l.bf16 %v2055_v34  ;;  %v855_v34 = vld [vmem:[%s2871_s4] sm:$0xff] }
  0x8f   : > { %v675_v45 = vsel %vm2891_vm3, %v2066_v38, %v2067_v37  ;;  %v637_v46 = vsel %vm2897_vm5, %v2056_v40, %v2057_v39  ;;  %v638_v49 = vsel %vm2897_vm5, %v2057_v39, %v2056_v40  ;;  %v676_v63 = vsel %vm2891_vm3, %v2067_v37, %v2066_v38  ;;  %vm2472_vm3 = vmpackc.low %vm705_vm8, %vm2216_vm13 }
  0x90   : > { %v2411_v50 = vpack.c.bf16 %v637_v46, %v616_v42  ;;  %v2413_v51 = vpack.c.bf16 %v638_v49, %v617_v48  ;;  %v2070_v53 = vpop.permute.xlu0 %2069  ;;  %v2075_v54 = vpop.permute.xlu1 %2074  ;;  %v2433_v3 = vpack.c.bf16 %v675_v45, %v656_v41  ;;  %vm2492_vm8 = vmpackc.low %vm704_vm12, %vm2216_vm13  ;;  %vm762_vm13 = vcmp.eq.s32.totalorder %v2501_v27, 1 }
  0x91   : > { %v2072_v57 = vunpack.i.h.bf16 %v2070_v53  ;;  %v2071_v58 = vunpack.i.l.bf16 %v2070_v53  ;;  %v2077_v60 = vunpack.i.h.bf16 %v2075_v54  ;;  %v2076_v61 = vunpack.i.l.bf16 %v2075_v54  ;;  %v856_v53 = vld [vmem:[%s2872_s5] sm:$0xff] }
  0x92   : > { %1862 = vmatprep.subr.msk.bf16.mxu0 %vm2403_vm0, %v2411_v50  ;;  %1886 = vmatprep.subr.msk.bf16.mxu1 %vm2403_vm0, %v2411_v50  ;;  %v1038_v54 = vld [vmem:[%s2876_s9] sm:$0xff] }
  0x93   : > { %1865 = vmatpush1.bf16.msk.msra.mxu0 %vm2417_vm1, %v2413_v51  ;;  %1889 = vmatpush1.bf16.msk.msra.mxu1 %vm2417_vm1, %v2413_v51  ;;  %v695_v5 = vsel %vm2892_vm6, %v2072_v57, %v2071_v58  ;;  %v694_v9 = vsel %vm2892_vm6, %v2071_v58, %v2072_v57  ;;  %v714_v18 = vsel %vm2893_vm10, %v2077_v60, %v2076_v61  ;;  %vm2496_vm6 = vmpackc.low %vm743_vm15, %vm724_vm14  ;;  %vm2923_vm14 = vcmp.lt.s32.totalorder %v2369_v17, 15 }
  0x94   : > { %v1872_v11 = vpack.c.bf16 %v695_v5, %v2329_v2  ;;  %1868 = vmatprep.subr.msk.bf16.mxu0 %vm2425_vm7, %v2433_v3  ;;  %1892 = vmatprep.subr.msk.bf16.mxu1 %vm2425_vm7, %v2433_v3  ;;  %v2080_v15 = vpop.permute.xlu0 %2079  ;;  %v1869_v2 = vpack.c.bf16 %v676_v63, %v657_v62  ;;  %v1875_v22 = vpack.c.bf16 %v694_v9, %v2327_v1  ;;  %v747_v28 = vpop.permute.xlu1 %746  ;;  %vm2924_vm15 = vmmov %vm2923_vm14  ;;  %v1440_v1 = vld [vmem:[%s2881_s14] sm:$0xff] }
  0x95   : > { %v2082_v19 = vunpack.i.h.bf16 %v2080_v15  ;;  %v2081_v20 = vunpack.i.l.bf16 %v2080_v15  ;;  %v713_v23 = vsel %vm2893_vm10, %v2076_v61, %v2077_v60  ;;  %vm723_vm10 = vcmp.eq.s32.totalorder %v718_v7, 1 }
  0x96   : > { %vm2512_vm12 = vmpackc.low %vm742_vm2, %vm723_vm10  ;;  %vm761_vm2 = vcmp.eq.s32.totalorder %v2517_v31, 1  ;;  %vm2898_vm10 = vcmask 588800  }
  0x97   : > { %1871 = vmatpush1.bf16.msk.msra.mxu0 %vm2464_vm11, %v1869_v2  ;;  %1895 = vmatpush1.bf16.msk.msra.mxu1 %vm2464_vm11, %v1869_v2  ;;  %v733_v10 = vsel %vm2895_vm9, %v2082_v19, %v2081_v20  ;;  %v732_v24 = vsel %vm2895_vm9, %v2081_v20, %v2082_v19  ;;  %vm750_vm9 = vcmp.lt.s32.totalorder %v2369_v17, 111 }
  0x98   : > { %v1878_v25 = vpack.c.bf16 %v733_v10, %v714_v18  ;;  %1874 = vmatprep.subr.msk.bf16.mxu0 %vm2472_vm3, %v1872_v11  ;;  %1898 = vmatprep.subr.msk.bf16.mxu1 %vm2472_vm3, %v1872_v11  ;;  %v749_v29 = vpop.permute.xlu0 %748  ;;  %v1881_v30 = vpack.c.bf16 %v732_v24, %v713_v23 }
  0x99   : > { %v752_v32 = vsel %vm750_vm9, %v749_v29, %v747_v28  ;;  %v751_v33 = vsel %vm750_vm9, %v747_v28, %v749_v29 }
  0x9b   : > { %1877 = vmatpush1.bf16.msk.msra.mxu0 %vm2492_vm8, %v1875_v22  ;;  %1901 = vmatpush1.bf16.msk.msra.mxu1 %vm2492_vm8, %v1875_v22 }
  0x9c   : > { %1880 = vmatprep.subr.msk.bf16.mxu0 %vm2496_vm6, %v1878_v25  ;;  %1904 = vmatprep.subr.msk.bf16.mxu1 %vm2496_vm6, %v1878_v25 }
  0x9f   : > { %1883 = vmatpush1.bf16.msk.msra.mxu0 %vm2512_vm12, %v1881_v30  ;;  %1907 = vmatpush1.bf16.msk.msra.mxu1 %vm2512_vm12, %v1881_v30 }
  0xa0   : > { %1749 = vmatprep.subr.msk.mxu0 %vm762_vm13, %v752_v32  ;;  %1766 = vmatprep.subr.msk.mxu1 %vm762_vm13, %v752_v32 }
  0xa3   : > { %1750 = vmatpush1.msk.msra.mxu0 %vm761_vm2, %v751_v33  ;;  %1767 = vmatpush1.msk.msra.mxu1 %vm761_vm2, %v751_v33 }
  0xa4   : > { %1751 = vmatmul.mubr.msk.f32.vlgmr.msra.gmra.mrb[0].mxu0 %vm2898_vm10, %v605_v14  ;;  %1910 = vmatprep.subr.msk.bf16.mxu0 %vm2403_vm0, %v2411_v50 }
  0xa5   : > { %1913 = vmatpush1.bf16.msk.msra.mxu0 %vm2417_vm1, %v2413_v51  ;;  %1015 = vmatprep.mubr.f32.mxu0 %v2214_v4  ;;  %v1025_v38 = vpop.permute.xlu1 %1024 }
  0xa6   : > { %1916 = vmatprep.subr.msk.bf16.mxu0 %vm2425_vm7, %v2433_v3  ;;  %1768 = vmatmul.mubr.msk.f32.vlgmr.msra.gmra.mrb[0].mxu1 %vm2898_vm10, %v855_v34 }
  0xa7   : > { %1170 = vmatprep.mubr.f32.mxu1 %v2214_v4 }
  0xa9   : > { %1919 = vmatpush1.bf16.msk.msra.mxu0 %vm2464_vm11, %v1869_v2  ;;  %v1031_v40 = vpop.permute.xlu0 %1030 }
  0xaa   : > { %1922 = vmatprep.subr.msk.bf16.mxu0 %vm2472_vm3, %v1872_v11 }
  0xad   : > { %1925 = vmatpush1.bf16.msk.msra.mxu0 %vm2492_vm8, %v1875_v22 }
  0xae   : > { %1928 = vmatprep.subr.msk.bf16.mxu0 %vm2496_vm6, %v1878_v25 }
  0xb1   : > { %1931 = vmatpush1.bf16.msk.msra.mxu0 %vm2512_vm12, %v1881_v30 }
  0xb2   : > { %1783 = vmatprep.subr.msk.mxu0 %vm762_vm13, %v752_v32 }
  0xb5   : > { %1784 = vmatpush1.msk.msra.mxu0 %vm761_vm2, %v751_v33 }
  0xb6   : > { %1785 = vmatmul.mubr.msk.f32.vlgmr.msra.gmra.mrb[2].mxu0 %vm2898_vm10, %v946_v35 }
  0xb7   : > { %1327 = vmatprep.mubr.f32.mxu0 %v2214_v4 }
 0x177   : > { %v2575_v36 = vpop.f32.mrb[0].mxu0 }
 0x178   : > { %v2577_v37 = vpop.f32.mrb[1].mxu0 }
 0x179   : > { %v2594_v50 = vpop.f32.mrb[0].mxu1 }
 0x17a   : > { %v2596_v51 = vpop.f32.mrb[1].mxu1 }
 0x189   : > { %v1017_v39 = vpop.f32.mrb[2].mxu0 }
 0x18a   : > { %v1027_v41 = vmul.f32 %v1025_v38, %v1017_v39  ;;  %v1019_v42 = vpop.f32.mrb[3].mxu0 }
 0x18b   : > { %v1028_v43 = vmul.f32 %v1025_v38, %v1019_v42 }
 0x18c   : > { %v1033_v44 = vadd.f32 %v1031_v40, %v1027_v41 }
 0x18d   : > { %v1034_v45 = vadd.f32 %v1031_v40, %v1028_v43 }
 0x18e   : > { %v2579_v46 = vmax.f32 %v1033_v44, 0.0 }
 0x18f   : > { %v2581_v48 = vmax.f32 %v1034_v45, 0.0 }
 0x191   : > { %v2095_v49 = vpack.i.bf16 %v2581_v48, %v2579_v46 }
 0x193   : > { %2096 = vrot.lane.b32.xlu0 %v2095_v49, %s2206_s20  ;;  %2086 = vrot.lane.b32.xlu1 %v2095_v49, %s2207_s21 }
 0x197   : > { %2106 = vrot.lane.b32.xlu0 %v2095_v49, %s2210_s23  ;;  %2091 = vrot.lane.b32.xlu1 %v2095_v49, %s2209_s2 }
 0x19b   : > { %2116 = vrot.lane.b32.xlu0 %v2095_v49, %s2212_s25  ;;  %2101 = vrot.lane.b32.xlu1 %v2095_v49, %s2921_s24 }
 0x19f   : > { %1097 = vrot.lane.b32.xlu0 %v2581_v48, %s2213_s26  ;;  %2111 = vrot.lane.b32.xlu1 %v2095_v49, %s2922_s28 }
 0x1a3   : > { %1095 = vrot.lane.b32.xlu1 %v2579_v46, %s2213_s26  ;;  %1179 = vperm.xlu0 %2120, %v1038_v54  }
 0x1a7   : > { %933 = vperm.xlu1 %2083, %v856_v53   ;;  %2158 = vset.pattern.permute.xlu0 %v2215_v6 }
 0x1ab   : > { %2121 = vset.pattern.permute.xlu1 %v2215_v6 }
 0x1ac   : > { %939 = vperm.xlu1 %2121, %v856_v53  }
 0x1b0   : > { %1185 = vperm.xlu1 %2121, %v1038_v54  }
 0x1b4   : > { %2157 = vset.pattern.permute.xlu1 %v2205_v0 }
 0x205   : > { %v2097_v55 = vpop.permute.xlu0 %2096  ;;  %v2087_v56 = vpop.permute.xlu1 %2086 }
 0x206   : > { %v2089_v57 = vunpack.i.h.bf16 %v2087_v56  ;;  %v2088_v58 = vunpack.i.l.bf16 %v2087_v56  ;;  %v2099_v3 = vunpack.i.h.bf16 %v2097_v55  ;;  %v2098_v5 = vunpack.i.l.bf16 %v2097_v55  ;;  %v1037_v55 = vld [vmem:[%s2875_s8] sm:$0xff] }
 0x208   : > { %v1043_v7 = vsel %vm2896_vm4, %v2088_v58, %v2089_v57  ;;  %v1044_v8 = vsel %vm2896_vm4, %v2089_v57, %v2088_v58  ;;  %v1059_v10 = vsel %vm2923_vm14, %v2098_v5, %v2099_v3  ;;  %v1060_v24 = vsel %vm2924_vm15, %v2099_v3, %v2098_v5 }
 0x209   : > { %v2107_v60 = vpop.permute.xlu0 %2106  ;;  %v2092_v61 = vpop.permute.xlu1 %2091  ;;  %vm2925_vm4 = vcmp.lt.s32.totalorder %v2369_v17, 127 }
 0x20a   : > { %v2094_v62 = vunpack.i.h.bf16 %v2092_v61  ;;  %v2093_v63 = vunpack.i.l.bf16 %v2092_v61  ;;  %v2109_v9 = vunpack.i.h.bf16 %v2107_v60  ;;  %v2108_v11 = vunpack.i.l.bf16 %v2107_v60  ;;  %vm2928_vm14 = vmmov %vm2925_vm4 }
 0x20c   : > { %v1051_v15 = vsel %vm2897_vm5, %v2093_v63, %v2094_v62  ;;  %v1052_v16 = vsel %vm2897_vm5, %v2094_v62, %v2093_v63  ;;  %v1076_v25 = vsel %vm2925_vm4, %v2109_v9, %v2108_v11  ;;  %vm2926_vm5 = vcmp.lt.s32.totalorder %v2369_v17, 1 }
 0x20d   : > { %v1932_v2 = vpack.c.bf16 %v1051_v15, %v1043_v7  ;;  %v1935_v18 = vpack.c.bf16 %v1052_v16, %v1044_v8  ;;  %v2102_v19 = vpop.permute.xlu1 %2101  ;;  %v2117_v23 = vpop.permute.xlu0 %2116  ;;  %vm2927_vm10 = vmmov %vm2926_vm5  ;;  %v1075_v39 = vsel %vm2928_vm14, %v2108_v11, %v2109_v9  ;;  %v1944_v40 = vpack.c.bf16 %v1076_v25, %v2581_v48 }
 0x20e   : > { %v2104_v20 = vunpack.i.h.bf16 %v2102_v19  ;;  %v2103_v22 = vunpack.i.l.bf16 %v2102_v19  ;;  %v2119_v14 = vunpack.i.h.bf16 %v2117_v23  ;;  %v2118_v34 = vunpack.i.l.bf16 %v2117_v23 }
 0x20f   : > { %1934 = vmatprep.subr.msk.bf16.mxu1 %vm2403_vm0, %v1932_v2  ;;  %vm2929_vm4 = vcmp.lt.s32.totalorder %v2369_v17, 113  ;;  %v1947_v42 = vpack.c.bf16 %v1075_v39, %v2579_v46  ;;  %vm2933_vm14 = vcmask 588800  }
 0x210   : > { %v1067_v28 = vsel %vm2926_vm5, %v2103_v22, %v2104_v20  ;;  %v1068_v29 = vsel %vm2927_vm10, %v2104_v20, %v2103_v22  ;;  %1937 = vmatpush1.bf16.msk.msra.mxu1 %vm2417_vm1, %v1935_v18  ;;  %vm2930_vm5 = vcmp.lt.s32.totalorder %v2369_v17, 112  ;;  %vm2931_vm10 = vmmov %vm2929_vm4 }
 0x211   : > { %v1938_v30 = vpack.c.bf16 %v1067_v28, %v1059_v10  ;;  %v1941_v32 = vpack.c.bf16 %v1068_v29, %v1060_v24  ;;  %v2112_v33 = vpop.permute.xlu1 %2111  ;;  %v1092_v43 = vsel %vm2930_vm5, %v2119_v14, %v2118_v34  ;;  %vm2932_vm15 = vmmov %vm2930_vm5  ;;  %v1098_v54 = vpop.permute.xlu0 %1097 }
 0x212   : > { %v2114_v35 = vunpack.i.h.bf16 %v2112_v33  ;;  %v2113_v38 = vunpack.i.l.bf16 %v2112_v33  ;;  %v1091_v48 = vsel %vm2932_vm15, %v2118_v34, %v2119_v14 }
 0x213   : > { %1940 = vmatprep.subr.msk.bf16.mxu1 %vm2425_vm7, %v1938_v30 }
 0x214   : > { %v1084_v41 = vsel %vm2929_vm4, %v2114_v35, %v2113_v38  ;;  %1943 = vmatpush1.bf16.msk.msra.mxu1 %vm2464_vm11, %v1941_v32  ;;  %v1083_v44 = vsel %vm2931_vm10, %v2113_v38, %v2114_v35  ;;  %vm2934_vm4 = vcmp.lt.s32.totalorder %v2369_v17, 16  ;;  %vm2936_vm10 = vcmp.lt.s32.totalorder %v2369_v17, 17 }
 0x215   : > { %1946 = vmatprep.subr.msk.bf16.mxu1 %vm2472_vm3, %v1944_v40  ;;  %v1950_v45 = vpack.c.bf16 %v1092_v43, %v1084_v41  ;;  %v1096_v49 = vpop.permute.xlu1 %1095  ;;  %v1953_v53 = vpack.c.bf16 %v1091_v48, %v1083_v44  ;;  %vm2935_vm5 = vmmov %vm2934_vm4 }
 0x216   : > { %v1100_v46 = vsel %vm750_vm9, %v1098_v54, %v1096_v49  ;;  %v1099_v56 = vsel %vm750_vm9, %v1096_v49, %v1098_v54  ;;  %vm2937_vm15 = vmmov %vm2936_vm10 }
 0x218   : > { %1949 = vmatpush1.bf16.msk.msra.mxu1 %vm2492_vm8, %v1947_v42 }
 0x219   : > { %1952 = vmatprep.subr.msk.bf16.mxu1 %vm2496_vm6, %v1950_v45 }
 0x21c   : > { %1955 = vmatpush1.bf16.msk.msra.mxu1 %vm2512_vm12, %v1953_v53 }
 0x21d   : > { %1800 = vmatprep.subr.msk.mxu1 %vm762_vm13, %v1100_v46 }
 0x220   : > { %1801 = vmatpush1.msk.msra.mxu1 %vm761_vm2, %v1099_v56 }
 0x221   : > { %1802 = vmatmul.mubr.msk.f32.vlgmr.msra.gmra.mrb[2].mxu1 %vm2933_vm14, %v1037_v55  ;;  %vm2938_vm14 = vcmp.lt.s32.totalorder %v2369_v17, 1 }
 0x222   : > { %1418 = vmatprep.mubr.f32.mxu1 %v2214_v4  ;;  %v1180_v60 = vpop.permute.xlu0 %1179 }
 0x226   : > { %v934_v57 = vpop.permute.xlu1 %933 }
 0x227   : > { %v936_v61 = vmul.f32 %v934_v57, %v2594_v50  ;;  %v937_v62 = vmul.f32 %v934_v57, %v2596_v51  ;;  %v1350_v50 = vld [vmem:[%s2880_s13] sm:$0xff] }
 0x22b   : > { %v940_v58 = vpop.permute.xlu1 %939 }
 0x22c   : > { %v942_v3 = vadd.f32 %v940_v58, %v936_v61  ;;  %v943_v8 = vadd.f32 %v940_v58, %v937_v62 }
 0x22e   : > { %v944_v2 = vmax.f32 %v942_v3, 0.0  ;;  %v945_v19 = vmax.f32 %v943_v8, 0.0 }
 0x22f   : > { %v1186_v9 = vpop.permute.xlu1 %1185 }
 0x2f4   : > { %v1172_v63 = vpop.f32.mrb[2].mxu1 }
 0x2f5   : > { %v1182_v5 = vmul.f32 %v1180_v60, %v1172_v63  ;;  %v1174_v7 = vpop.f32.mrb[3].mxu1 }
 0x2f6   : > { %v1183_v11 = vmul.f32 %v1180_v60, %v1174_v7 }
 0x2f7   : > { %v1188_v15 = vadd.f32 %v1186_v9, %v1182_v5 }
 0x2f8   : > { %v1189_v16 = vadd.f32 %v1186_v9, %v1183_v11 }
 0x2f9   : > { %v1190_v18 = vmax.f32 %v1188_v15, 0.0 }
 0x2fa   : > { %v1191_v20 = vmax.f32 %v1189_v16, 0.0 }
 0x2fb   : > { %v1194_v22 = vadd.f32 %v1190_v18, %v944_v2 }
 0x2fc   : > { %v1195_v10 = vadd.f32 %v1191_v20, %v945_v19 }
 0x2fe   : > { %v2127_v23 = vpack.i.bf16 %v1195_v10, %v1194_v22 }
 0x300   : > { %2128 = vrot.lane.b32.xlu1 %v2127_v23, %s2209_s2  ;;  %2123 = vrot.lane.b32.xlu0 %v2127_v23, %s2207_s21 }
 0x304   : > { %2138 = vrot.lane.b32.xlu1 %v2127_v23, %s2921_s24  ;;  %2133 = vrot.lane.b32.xlu0 %v2127_v23, %s2206_s20 }
 0x308   : > { %2148 = vrot.lane.b32.xlu1 %v2127_v23, %s2922_s28  ;;  %2143 = vrot.lane.b32.xlu0 %v2127_v23, %s2210_s23 }
 0x30c   : > { %1252 = vrot.lane.b32.xlu1 %v1194_v22, %s2213_s26  ;;  %2153 = vrot.lane.b32.xlu0 %v2127_v23, %s2212_s25  ;;  %v1349_v23 = vld [vmem:[%s2879_s12] sm:$0xff] }
 0x310   : > { %1254 = vrot.lane.b32.xlu0 %v1195_v10, %s2213_s26  ;;  %1427 = vperm.xlu1 %2157, %v1350_v50  }
 0x314   : > { %1433 = vperm.xlu0 %2158, %v1350_v50  }
 0x318   : > { %2194 = vset.pattern.permute.xlu0 %v2205_v0 }
 0x372   : > { %v2129_v51 = vpop.permute.xlu1 %2128  ;;  %v2124_v24 = vpop.permute.xlu0 %2123 }
 0x373   : > { %v2131_v25 = vunpack.i.h.bf16 %v2129_v51  ;;  %v2130_v28 = vunpack.i.l.bf16 %v2129_v51  ;;  %v2126_v29 = vunpack.i.h.bf16 %v2124_v24  ;;  %v2125_v30 = vunpack.i.l.bf16 %v2124_v24 }
 0x375   : > { %v1208_v32 = vsel %vm2934_vm4, %v2130_v28, %v2131_v25  ;;  %v1209_v33 = vsel %vm2935_vm5, %v2131_v25, %v2130_v28  ;;  %v1200_v14 = vsel %vm2936_vm10, %v2125_v30, %v2126_v29  ;;  %v1201_v34 = vsel %vm2937_vm15, %v2126_v29, %v2125_v30  ;;  %vm2939_vm4 = vmmov %vm2938_vm14 }
 0x376   : > { %v1956_v35 = vpack.c.bf16 %v1208_v32, %v1200_v14  ;;  %v1959_v0 = vpack.c.bf16 %v1209_v33, %v1201_v34  ;;  %v2139_v38 = vpop.permute.xlu1 %2138  ;;  %v2134_v39 = vpop.permute.xlu0 %2133  ;;  %vm2940_vm5 = vcmp.lt.s32.totalorder %v2369_v17, 15  ;;  %vm2942_vm15 = vcmp.lt.s32.totalorder %v2369_v17, 127  ;;  %v1192_v34 = vld [vmem:[%s2877_s10] sm:$0xff] }
 0x377   : > { %v2141_v40 = vunpack.i.h.bf16 %v2139_v38  ;;  %v2140_v41 = vunpack.i.l.bf16 %v2139_v38  ;;  %v2136_v42 = vunpack.i.h.bf16 %v2134_v39  ;;  %v2135_v43 = vunpack.i.l.bf16 %v2134_v39  ;;  %vm2941_vm10 = vmmov %vm2940_vm5  ;;  %v1193_v38 = vld [vmem:[%s2878_s11] sm:$0xff] }
 0x378   : > { %1958 = vmatprep.subr.msk.bf16.mxu0 %vm2403_vm0, %v1956_v35  ;;  %1982 = vmatprep.subr.msk.bf16.mxu1 %vm2403_vm0, %v1956_v35 }
 0x379   : > { %v1224_v44 = vsel %vm2938_vm14, %v2140_v41, %v2141_v40  ;;  %v1225_v45 = vsel %vm2939_vm4, %v2141_v40, %v2140_v41  ;;  %v1216_v48 = vsel %vm2940_vm5, %v2135_v43, %v2136_v42  ;;  %v1217_v49 = vsel %vm2941_vm10, %v2136_v42, %v2135_v43  ;;  %1961 = vmatpush1.bf16.msk.msra.mxu0 %vm2417_vm1, %v1959_v0  ;;  %vm2943_vm14 = vmmov %vm2942_vm15 }
 0x37a   : > { %v1962_v53 = vpack.c.bf16 %v1224_v44, %v1216_v48  ;;  %v1965_v54 = vpack.c.bf16 %v1225_v45, %v1217_v49  ;;  %1985 = vmatpush1.bf16.msk.msra.mxu1 %vm2417_vm1, %v1959_v0  ;;  %v2149_v46 = vpop.permute.xlu1 %2148  ;;  %v2144_v55 = vpop.permute.xlu0 %2143  ;;  %vm2944_vm4 = vcmp.lt.s32.totalorder %v2369_v17, 113  ;;  %vm2946_vm10 = vcmp.lt.s32.totalorder %v2369_v17, 112  ;;  %v1441_v0 = vld [vmem:[%s2882_s15] sm:$0xff] }
 0x37b   : > { %v2146_v56 = vunpack.i.h.bf16 %v2144_v55  ;;  %v2145_v57 = vunpack.i.l.bf16 %v2144_v55  ;;  %v2151_v58 = vunpack.i.h.bf16 %v2149_v46  ;;  %v2150_v60 = vunpack.i.l.bf16 %v2149_v46  ;;  %vm2945_vm5 = vmmov %vm2944_vm4 }
 0x37c   : > { %1964 = vmatprep.subr.msk.bf16.mxu0 %vm2425_vm7, %v1962_v53  ;;  %1988 = vmatprep.subr.msk.bf16.mxu1 %vm2425_vm7, %v1962_v53 }
 0x37d   : > { %v1232_v61 = vsel %vm2942_vm15, %v2145_v57, %v2146_v56  ;;  %v1233_v62 = vsel %vm2943_vm14, %v2146_v56, %v2145_v57  ;;  %1967 = vmatpush1.bf16.msk.msra.mxu0 %vm2464_vm11, %v1965_v54  ;;  %v1240_v9 = vsel %vm2944_vm4, %v2150_v60, %v2151_v58  ;;  %v1241_v11 = vsel %vm2945_vm5, %v2151_v58, %v2150_v60  ;;  %vm2947_vm15 = vmmov %vm2946_vm10 }
 0x37e   : > { %v1968_v63 = vpack.c.bf16 %v1233_v62, %v1195_v10  ;;  %v1971_v3 = vpack.c.bf16 %v1232_v61, %v1194_v22  ;;  %1991 = vmatpush1.bf16.msk.msra.mxu1 %vm2464_vm11, %v1965_v54  ;;  %v2154_v5 = vpop.permute.xlu0 %2153  ;;  %v1253_v20 = vpop.permute.xlu1 %1252  ;;  %vm2948_vm14 = vcmask 588800   ;;  %vm2950_vm5 = vcmp.lt.s32.totalorder %v2369_v17, 17 }
 0x37f   : > { %v2156_v7 = vunpack.i.h.bf16 %v2154_v5  ;;  %v2155_v8 = vunpack.i.l.bf16 %v2154_v5  ;;  %vm2949_vm4 = vmmov %vm2948_vm14 }
 0x380   : > { %1970 = vmatprep.subr.msk.bf16.mxu0 %vm2472_vm3, %v1968_v63  ;;  %1994 = vmatprep.subr.msk.bf16.mxu1 %vm2472_vm3, %v1968_v63 }
 0x381   : > { %v1248_v15 = vsel %vm2946_vm10, %v2155_v8, %v2156_v7  ;;  %v1249_v16 = vsel %vm2947_vm15, %v2156_v7, %v2155_v8  ;;  %1973 = vmatpush1.bf16.msk.msra.mxu0 %vm2492_vm8, %v1971_v3  ;;  %vm2951_vm10 = vmmov %vm2950_vm5  ;;  %vm2952_vm15 = vcmp.lt.s32.totalorder %v2369_v17, 16 }
 0x382   : > { %v1974_v2 = vpack.c.bf16 %v1249_v16, %v1241_v11  ;;  %v1977_v18 = vpack.c.bf16 %v1248_v15, %v1240_v9  ;;  %1997 = vmatpush1.bf16.msk.msra.mxu1 %vm2492_vm8, %v1971_v3  ;;  %v1255_v19 = vpop.permute.xlu0 %1254 }
 0x383   : > { %v1257_v22 = vsel %vm750_vm9, %v1255_v19, %v1253_v20  ;;  %v1256_v10 = vsel %vm750_vm9, %v1253_v20, %v1255_v19 }
 0x384   : > { %1976 = vmatprep.subr.msk.bf16.mxu0 %vm2496_vm6, %v1974_v2  ;;  %2000 = vmatprep.subr.msk.bf16.mxu1 %vm2496_vm6, %v1974_v2 }
 0x385   : > { %1979 = vmatpush1.bf16.msk.msra.mxu0 %vm2512_vm12, %v1977_v18 }
 0x386   : > { %2003 = vmatpush1.bf16.msk.msra.mxu1 %vm2512_vm12, %v1977_v18  ;;  %1817 = vmatprep.subr.msk.mxu0 %vm762_vm13, %v1257_v22 }
 0x387   : > { %1834 = vmatprep.subr.msk.mxu1 %vm762_vm13, %v1257_v22 }
 0x389   : > { %1818 = vmatpush1.msk.msra.mxu0 %vm761_vm2, %v1256_v10 }
 0x38a   : > { %1835 = vmatpush1.msk.msra.mxu1 %vm761_vm2, %v1256_v10  ;;  %1819 = vmatmul.mubr.msk.f32.vlgmr.msra.gmra.mrb[4].mxu0 %vm2949_vm4, %v1192_v34  ;;  %vm2954_vm4 = vcmp.lt.s32.totalorder %v2369_v17, 15 }
 0x38b   : > { %1836 = vmatmul.mubr.msk.f32.vlgmr.msra.gmra.mrb[4].mxu1 %vm2948_vm14, %v1349_v23  ;;  %1573 = vmatprep.mubr.f32.mxu0 %v2214_v4  ;;  %v606_v4 = vld [vmem:[%s2870_s3] sm:$0xff]  ;;  %vm2953_vm14 = vmmov %vm2952_vm15 }
 0x38f   : > { %v1428_v50 = vpop.permute.xlu1 %1427 }
 0x393   : > { %v1434_v24 = vpop.permute.xlu0 %1433 }
 0x45e   : > { %v1420_v51 = vpop.f32.mrb[4].mxu1 }
 0x45f   : > { %v1430_v25 = vmul.f32 %v1428_v50, %v1420_v51  ;;  %v1422_v28 = vpop.f32.mrb[5].mxu1 }
 0x460   : > { %v1431_v29 = vmul.f32 %v1428_v50, %v1422_v28 }
 0x461   : > { %v1436_v30 = vadd.f32 %v1434_v24, %v1430_v25 }
 0x462   : > { %v1437_v32 = vadd.f32 %v1434_v24, %v1431_v29 }
 0x463   : > { %v2759_v33 = vmax.f32 %v1436_v30, 0.0 }
 0x464   : > { %v2761_v14 = vmax.f32 %v1437_v32, 0.0 }
 0x466   : > { %v2169_v35 = vpack.i.bf16 %v2761_v14, %v2759_v33 }
 0x468   : > { %2170 = vrot.lane.b32.xlu0 %v2169_v35, %s2206_s20  ;;  %2160 = vrot.lane.b32.xlu1 %v2169_v35, %s2207_s21  ;;  %s595_s20 = scalar_lea.vmem %s2884_s17, %s2321_s29 }
 0x46c   : > { %2180 = vrot.lane.b32.xlu0 %v2169_v35, %s2210_s23  ;;  %2165 = vrot.lane.b32.xlu1 %v2169_v35, %s2209_s2  ;;  %s600_s2 = scalar_lea.vmem %s2885_s18, %s2321_s29 }
 0x470   : > { %2190 = vrot.lane.b32.xlu0 %v2169_v35, %s2212_s25  ;;  %2175 = vrot.lane.b32.xlu1 %v2169_v35, %s2921_s24 }
 0x474   : > { %1500 = vrot.lane.b32.xlu0 %v2761_v14, %s2213_s26  ;;  %2185 = vrot.lane.b32.xlu1 %v2169_v35, %s2922_s28  ;;  %v1329_v35 = vpop.f32.mrb[4].mxu0 }
 0x478   : > { %1498 = vrot.lane.b32.xlu1 %v2759_v33, %s2213_s26  ;;  %1336 = vperm.xlu0 %2194, %v1193_v38  }
 0x47c   : > { %842 = vperm.xlu1 %2157, %v606_v4   ;;  %2196 = vset.pattern.permute.xlu0 %v2215_v6 }
 0x47d   : > { %1342 = vperm.xlu0 %2196, %v1193_v38  }
 0x480   : > { %1582 = vperm.xlu1 %2157, %v1441_v0  }
 0x484   : > { %2195 = vset.pattern.permute.xlu1 %v2215_v6 }
 0x485   : > { %848 = vperm.xlu1 %2195, %v606_v4  }
 0x489   : > { %1588 = vperm.xlu1 %2195, %v1441_v0  }
 0x4da   : > { %v2171_v39 = vpop.permute.xlu0 %2170  ;;  %v2161_v40 = vpop.permute.xlu1 %2160 }
 0x4db   : > { %v2163_v41 = vunpack.i.h.bf16 %v2161_v40  ;;  %v2162_v42 = vunpack.i.l.bf16 %v2161_v40  ;;  %v2173_v49 = vunpack.i.h.bf16 %v2171_v39  ;;  %v2172_v53 = vunpack.i.l.bf16 %v2171_v39 }
 0x4dd   : > { %v1446_v54 = vsel %vm2950_vm5, %v2162_v42, %v2163_v41  ;;  %v1447_v46 = vsel %vm2951_vm10, %v2163_v41, %v2162_v42  ;;  %v1462_v3 = vsel %vm2954_vm4, %v2172_v53, %v2173_v49  ;;  %vm2955_vm5 = vmmov %vm2954_vm4  ;;  %vm2956_vm10 = vcmp.lt.s32.totalorder %v2369_v17, 127 }
 0x4de   : > { %v2181_v43 = vpop.permute.xlu0 %2180  ;;  %v2166_v44 = vpop.permute.xlu1 %2165  ;;  %v1463_v7 = vsel %vm2955_vm5, %v2173_v49, %v2172_v53  ;;  %vm2960_vm4 = vcmp.lt.s32.totalorder %v2369_v17, 113 }
 0x4df   : > { %v2168_v45 = vunpack.i.h.bf16 %v2166_v44  ;;  %v2167_v48 = vunpack.i.l.bf16 %v2166_v44  ;;  %v2183_v55 = vunpack.i.h.bf16 %v2181_v43  ;;  %v2182_v56 = vunpack.i.l.bf16 %v2181_v43  ;;  %vm2962_vm5 = vmmov %vm2960_vm4 }
 0x4e1   : > { %v1454_v6 = vsel %vm2952_vm15, %v2167_v48, %v2168_v45  ;;  %v1455_v57 = vsel %vm2953_vm14, %v2168_v45, %v2167_v48  ;;  %v1479_v8 = vsel %vm2956_vm10, %v2183_v55, %v2182_v56  ;;  %vm2957_vm15 = vcmp.lt.s32.totalorder %v2369_v17, 1 }
 0x4e2   : > { %v2004_v58 = vpack.c.bf16 %v1454_v6, %v1446_v54  ;;  %v2007_v60 = vpack.c.bf16 %v1455_v57, %v1447_v46  ;;  %v2176_v61 = vpop.permute.xlu1 %2175  ;;  %v2191_v5 = vpop.permute.xlu0 %2190  ;;  %vm2958_vm14 = vmmov %vm2957_vm15  ;;  %v2016_v10 = vpack.c.bf16 %v1479_v8, %v2761_v14 }
 0x4e3   : > { %v2178_v62 = vunpack.i.h.bf16 %v2176_v61  ;;  %v2177_v63 = vunpack.i.l.bf16 %v2176_v61  ;;  %v2193_v47 = vunpack.i.h.bf16 %v2191_v5  ;;  %v2192_v18 = vunpack.i.l.bf16 %v2191_v5 }
 0x4e4   : > { %2006 = vmatprep.subr.msk.bf16.mxu0 %vm2403_vm0, %v2004_v58  ;;  %vm2959_vm0 = vmmov %vm2956_vm10 }
 0x4e5   : > { %v1470_v9 = vsel %vm2957_vm15, %v2177_v63, %v2178_v62  ;;  %v1471_v11 = vsel %vm2958_vm14, %v2178_v62, %v2177_v63  ;;  %2009 = vmatpush1.bf16.msk.msra.mxu0 %vm2417_vm1, %v2007_v60  ;;  %v1478_v22 = vsel %vm2959_vm0, %v2182_v56, %v2183_v55  ;;  %vm2961_vm1 = vcmp.lt.s32.totalorder %v2369_v17, 112 }
 0x4e6   : > { %v2010_v15 = vpack.c.bf16 %v1470_v9, %v1462_v3  ;;  %v2013_v16 = vpack.c.bf16 %v1471_v11, %v1463_v7  ;;  %v2186_v2 = vpop.permute.xlu1 %2185  ;;  %v2019_v52 = vpack.c.bf16 %v1478_v22, %v2759_v33  ;;  %v1495_v50 = vsel %vm2961_vm1, %v2193_v47, %v2192_v18  ;;  %v1501_v25 = vpop.permute.xlu0 %1500 }
 0x4e7   : > { %v2188_v19 = vunpack.i.h.bf16 %v2186_v2  ;;  %v2187_v20 = vunpack.i.l.bf16 %v2186_v2 }
 0x4e8   : > { %2012 = vmatprep.subr.msk.bf16.mxu0 %vm2425_vm7, %v2010_v15  ;;  %vm2963_vm7 = vmmov %vm2961_vm1 }
 0x4e9   : > { %v1487_v23 = vsel %vm2960_vm4, %v2188_v19, %v2187_v20  ;;  %2015 = vmatpush1.bf16.msk.msra.mxu0 %vm2464_vm11, %v2013_v16  ;;  %v1486_v51 = vsel %vm2962_vm5, %v2187_v20, %v2188_v19  ;;  %v1494_v59 = vsel %vm2963_vm7, %v2192_v18, %v2193_v47 }
 0x4ea   : > { %2018 = vmatprep.subr.msk.bf16.mxu0 %vm2472_vm3, %v2016_v10  ;;  %v2022_v24 = vpack.c.bf16 %v1495_v50, %v1487_v23  ;;  %v1499_v12 = vpop.permute.xlu1 %1498  ;;  %v2025_v21 = vpack.c.bf16 %v1494_v59, %v1486_v51  ;;  %vm2964_vm3 = vcmask 588800  }
 0x4eb   : > { %v1503_v28 = vsel %vm750_vm9, %v1501_v25, %v1499_v12  ;;  %v1502_v26 = vsel %vm750_vm9, %v1499_v12, %v1501_v25 }
 0x4ed   : > { %2021 = vmatpush1.bf16.msk.msra.mxu0 %vm2492_vm8, %v2019_v52 }
 0x4ee   : > { %2024 = vmatprep.subr.msk.bf16.mxu0 %vm2496_vm6, %v2022_v24 }
 0x4f1   : > { %2027 = vmatpush1.bf16.msk.msra.mxu0 %vm2512_vm12, %v2025_v21 }
 0x4f2   : > { %1851 = vmatprep.subr.msk.mxu0 %vm762_vm13, %v1503_v28 }
 0x4f5   : > { %1852 = vmatpush1.msk.msra.mxu0 %vm761_vm2, %v1502_v26 }
 0x4f6   : > { %1853 = vmatmul.mubr.msk.f32.vlgmr.msra.gmra.mrb[6].mxu0 %vm2964_vm3, %v1440_v1 }
 0x4f7   : > { %v1337_v31 = vpop.permute.xlu0 %1336 }
 0x4f8   : > { %v1339_v0 = vmul.f32 %v1337_v31, %v1329_v35 }
 0x4fb   : > { %v843_v29 = vpop.permute.xlu1 %842 }
 0x4fc   : > { %v845_v13 = vmul.f32 %v843_v29, %v2575_v36  ;;  %v846_v32 = vmul.f32 %v843_v29, %v2577_v37  ;;  %v1343_v4 = vpop.permute.xlu0 %1342  ;;  %v1331_v36 = vpop.f32.mrb[5].mxu0 }
 0x4fd   : > { %v1340_v38 = vmul.f32 %v1337_v31, %v1331_v36  ;;  %v1345_v37 = vadd.f32 %v1343_v4, %v1339_v0 }
 0x4ff   : > { %v1583_v30 = vpop.permute.xlu1 %1582  ;;  %v1346_v39 = vadd.f32 %v1343_v4, %v1340_v38  ;;  %v1347_v40 = vmax.f32 %v1345_v37, 0.0 }
 0x501   : > { %v1348_v41 = vmax.f32 %v1346_v39, 0.0  ;;  %1597 = vst [vmem:[%s595_s20] sm:$0xff] %v1347_v40 }
 0x503   : > { %1598 = vst [vmem:[%s595_s20 + $0x8] sm:$0xff] %v1348_v41 }
 0x504   : > { %v849_v27 = vpop.permute.xlu1 %848 }
 0x505   : > { %v851_v33 = vadd.f32 %v849_v27, %v845_v13  ;;  %v852_v14 = vadd.f32 %v849_v27, %v846_v32 }
 0x507   : > { %v853_v17 = vmax.f32 %v851_v33, 0.0  ;;  %v854_v34 = vmax.f32 %v852_v14, 0.0 }
 0x508   : > { %v1589_v45 = vpop.permute.xlu1 %1588 }
 0x509   : > { %1595 = vst [vmem:[%s590_s19] sm:$0xff] %v853_v17  ;;  %1596 = vst [vmem:[%s590_s19 + $0x8] sm:$0xff] %v854_v34 }
 0x5c9   : > { %v1575_v42 = vpop.f32.mrb[6].mxu0 }
 0x5ca   : > { %v1585_v43 = vmul.f32 %v1583_v30, %v1575_v42  ;;  %v1577_v44 = vpop.f32.mrb[7].mxu0 }
 0x5cb   : > { %v1586_v48 = vmul.f32 %v1583_v30, %v1577_v44 }
 0x5cc   : > { %v1591_v49 = vadd.f32 %v1589_v45, %v1585_v43 }
 0x5cd   : > { %v1592_v53 = vadd.f32 %v1589_v45, %v1586_v48 }
 0x5ce   : > { %v1593_v54 = vmax.f32 %v1591_v49, 0.0 }
 0x5cf   : > { %v1594_v46 = vmax.f32 %v1592_v53, 0.0 }
 0x5d0   : > { %1599 = vst [vmem:[%s600_s2] sm:$0xff] %v1593_v54 }
 0x5d1   : > { %1600 = vst [vmem:[%s600_s2 + $0x8] sm:$0xff] %v1594_v46 }
 0x5d2 PF: > { %s29_s27 = sadd.s32 1, %s2203_s27  }
 0x5d3   : > { %p26_p4 = scmp.ge.s32.totalorder %s29_s27, 4  }
 0x5d5   :  { %28 = sbr.rel (!%p26_p4) target bundleno = 4 (0x4), region = 138 }

</bundles_post_ra>
